<compile_context>
chip_gen: v6e
topology: v6e:2x2x1
jax: 0.10.0
libtpu: 0.0.40
codegen_flags: <defaults>
</compile_context>

<pallas_src>
import jax
import jax.numpy as jnp
from jax.experimental import pallas as pl
from jax.experimental.pallas import tpu as pltpu

COMPUTE_DTYPE = jnp.bfloat16        # matmul operand dtype (accumulation stays f32)
_VMEM_LIMIT = 48 * 1024 * 1024      # safe on v5e/v6e (128 MiB phys) and v7x (64 MiB)


# ----------------------------------------------------------------------------
# Helpers
# ----------------------------------------------------------------------------
def _round_up(n, m):
    return ((n + m - 1) // m) * m


def _pad_to(x, target_shape):
    pads = [(0, t - s) for s, t in zip(x.shape, target_shape)]
    if all(p == (0, 0) for p in pads):
        return x
    return jnp.pad(x, pads)


def _divisor_tile(n, target, align):
    """Largest multiple of `align` that divides n and is <= max(target, align).
    `n` must itself be a multiple of `align`, so `align` is always a valid
    fallback (no silent full-extent fallback -> no VMEM-OOM cliff)."""
    t = min(n, (max(target, align) // align) * align)
    while t > align and n % t:
        t -= align
    return t


# ----------------------------------------------------------------------------
# Kernel 1: tiled matmul + bias (hoisted input projections + vocab projection).
# Fully parallel grid -> megacore-shardable.
# ----------------------------------------------------------------------------
def _matmul_bias_kernel(x_ref, w_ref, b_ref, o_ref):
    o_ref[...] = (
        jnp.dot(x_ref[...], w_ref[...], preferred_element_type=jnp.float32)
        + b_ref[...]                      # bias stays f32, added post-accumulation
    ).astype(o_ref.dtype)


def matmul_bias(x, w, b, *, out_dtype=jnp.float32, tm_target=512, tn_target=512):
    """x: (M, K), w: (K, N) compute dtype, b: (1, N) f32 -> (M, N) out_dtype.
    K and N must already be 128-aligned (wrapper pads them); M is padded up to
    a row-tile multiple internally and sliced back (zero rows are exact).
    Rows-outer / cols-inner grid: X block stays resident while W is streamed,
    so W is re-read only M_pad//tm times (once, for typical T*B <= tm_target)."""
    M, K = x.shape
    _, N = w.shape
    x = x.astype(w.dtype)
    row_align = 16 if w.dtype == jnp.bfloat16 else 8
    tm = min(_round_up(M, row_align), _round_up(tm_target, row_align))
    tn = _divisor_tile(N, tn_target, 128)
    M_pad = _round_up(M, tm)
    x = _pad_to(x, (M_pad, K))

    out = pl.pallas_call(
        _matmul_bias_kernel,
        out_shape=jax.ShapeDtypeStruct((M_pad, N), out_dtype),
        grid_spec=pltpu.PrefetchScalarGridSpec(
            num_scalar_prefetch=0,
            grid=(M_pad // tm, N // tn),
            in_specs=[
                pl.BlockSpec((tm, K), lambda i, j: (i, 0)),
                pl.BlockSpec((K, tn), lambda i, j: (0, j)),
                pl.BlockSpec((1, tn), lambda i, j: (0, j)),
            ],
            out_specs=pl.BlockSpec((tm, tn), lambda i, j: (i, j)),
        ),
        compiler_params=pltpu.CompilerParams(
            dimension_semantics=("parallel", "parallel"),
            vmem_limit_bytes=_VMEM_LIMIT),
    )(x, w, b)
    return out[:M] if M_pad != M else out


# ----------------------------------------------------------------------------
# Kernel 2: RNN recurrence.  grid = (batch_blocks [parallel], time_chunks
# [arbitrary]); per timestep only the unavoidable h @ W_hh + tanh remain on the
# serial chain.  Hidden state is carried across time chunks in VMEM scratch.
# `last_only=True` emits just the final hidden state (encoder): no (T,B,H)
# HBM writeback.  Padded timesteps keep h frozen via a cheap VPU select.
# ----------------------------------------------------------------------------
def _make_rnn_kernel(tt, t_actual, t_pad, last_only):
    need_mask = t_pad != t_actual

    def kernel(xw_ref, h0_ref, whh_ref, out_ref, h_scr):
        c = pl.program_id(1)

        @pl.when(c == 0)
        def _():
            h_scr[...] = h0_ref[...].astype(jnp.float32)

        h = h_scr[...]
        whh = whh_ref[...]        # same block every step -> stays VMEM-resident
        # TODO(synk): on v6e/v7x, keep W_hh stationary in the MXU across the
        # unrolled chunk via pltpu.matmul_push_rhs / matmul_acc_lhs / matmul_pop
        # to shorten the per-step serial chain further.
        for t in range(tt):       # small static chunk -> fully unrolled
            h_new = jnp.tanh(
                xw_ref[t].astype(jnp.float32)
                + jnp.dot(h.astype(whh.dtype), whh,
                          preferred_element_type=jnp.float32))
            if need_mask:
                # Padded timesteps (global index >= t_actual) leave h unchanged,
                # so zero-padding T to a tile multiple is mathematically exact.
                h = jnp.where(c * tt + t < t_actual, h_new, h)
            else:
                h = h_new
            if not last_only:
                out_ref[t] = h.astype(out_ref.dtype)
        h_scr[...] = h

        if last_only:
            @pl.when(c == pl.num_programs(1) - 1)
            def _():
                out_ref[...] = h.astype(out_ref.dtype)

    return kernel


def rnn_scan(xw, h0, whh, *, t_actual, last_only=False, out_dtype=None,
             tt_target=16):
    """xw: (T_pad, B, H) precomputed x@W_ih + b;  h0: (B, H) f32;  whh: (H, H).
    Returns all hidden states (T_pad, B, H) or, with last_only, the final (B, H)."""
    T_pad, B, H = xw.shape
    tt = min(T_pad, tt_target)
    assert T_pad % tt == 0
    if out_dtype is None:
        out_dtype = jnp.float32 if last_only else xw.dtype

    # Parallel batch-block axis: shards the independent per-row recurrences
    # across the two TensorCores on v7x.  Kept at a single block for small
    # batches where the recurrence is MXU-latency-bound (splitting would only
    # lengthen the serial chain on single-TC chips).
    nb = 2 if (B >= 64 and B % 32 == 0) else 1
    tb = B // nb

    if last_only:
        out_shape = jax.ShapeDtypeStruct((B, H), out_dtype)
        out_specs = pl.BlockSpec((tb, H), lambda b, c: (b, 0))
    else:
        out_shape = jax.ShapeDtypeStruct((T_pad, B, H), out_dtype)
        out_specs = pl.BlockSpec((tt, tb, H), lambda b, c: (c, b, 0))

    return pl.pallas_call(
        _make_rnn_kernel(tt, t_actual, T_pad, last_only),
        out_shape=out_shape,
        grid_spec=pltpu.PrefetchScalarGridSpec(
            num_scalar_prefetch=0,
            grid=(nb, T_pad // tt),
            in_specs=[
                pl.BlockSpec((tt, tb, H), lambda b, c: (c, b, 0)),
                pl.BlockSpec((tb, H), lambda b, c: (b, 0)),
                pl.BlockSpec((H, H), lambda b, c: (0, 0)),
            ],
            out_specs=out_specs,
            scratch_shapes=[pltpu.VMEM((tb, H), jnp.float32)],
        ),
        compiler_params=pltpu.CompilerParams(
            dimension_semantics=("parallel", "arbitrary"),
            vmem_limit_bytes=_VMEM_LIMIT),
    )(xw, h0, whh)


# ----------------------------------------------------------------------------
# Parameters (PyTorch-shaped semantics; stored pre-transposed for x @ W)
# ----------------------------------------------------------------------------
def init_params(key, src_vocab, tgt_vocab, emb_dim, hidden_dim):
    ks = jax.random.split(key, 10)
    s = 0.1
    return {
        "emb_src": jax.random.normal(ks[0], (src_vocab, emb_dim), jnp.float32) * s,
        "emb_tgt": jax.random.normal(ks[1], (tgt_vocab, emb_dim), jnp.float32) * s,
        "enc_wih": jax.random.normal(ks[2], (emb_dim, hidden_dim), jnp.float32) * s,
        "enc_whh": jax.random.normal(ks[3], (hidden_dim, hidden_dim), jnp.float32) * s,
        "enc_b":   jax.random.normal(ks[4], (1, hidden_dim), jnp.float32) * s,  # b_ih+b_hh folded (tanh-exact)
        "dec_wih": jax.random.normal(ks[5], (emb_dim, hidden_dim), jnp.float32) * s,
        "dec_whh": jax.random.normal(ks[6], (hidden_dim, hidden_dim), jnp.float32) * s,
        "dec_b":   jax.random.normal(ks[7], (1, hidden_dim), jnp.float32) * s,
        "out_w":   jax.random.normal(ks[8], (hidden_dim, tgt_vocab), jnp.float32) * s,
        "out_b":   jax.random.normal(ks[9], (1, tgt_vocab), jnp.float32) * s,
    }


def count_parameters(params):
    """Mirror of BaseSeq2Seq.count_parameters."""
    return sum(int(v.size) for v in params.values())


# ----------------------------------------------------------------------------
# Forward pass
# ----------------------------------------------------------------------------
def seq2seq_forward(params, src_tokens, tgt_tokens, compute_dtype=COMPUTE_DTYPE):
    """src_tokens: (B, T_src) int32, tgt_tokens: (B, T_tgt) int32.
    Returns logits (B, T_tgt, V) f32 -- batch-first like PyTorch (batch_first=True)."""
    B, T_src = src_tokens.shape
    _, T_tgt = tgt_tokens.shape
    E = params["emb_src"].shape[1]
    H = params["enc_whh"].shape[0]
    V = params["out_w"].shape[1]

    cd = compute_dtype
    # (16,128)-aligned padded sizes (16 rows for bf16 sublane packing);
    # zero padding keeps the math exact.
    B_p = _round_up(B, 16)
    E_p = _round_up(E, 128)
    H_p = _round_up(H, 128)
    V_p = _round_up(V, 128)
    TT = 16
    Ts_p = T_src if T_src <= TT else _round_up(T_src, TT)
    Tt_p = T_tgt if T_tgt <= TT else _round_up(T_tgt, TT)

    emb_src = _pad_to(params["emb_src"], (params["emb_src"].shape[0], E_p)).astype(cd)
    emb_tgt = _pad_to(params["emb_tgt"], (params["emb_tgt"].shape[0], E_p)).astype(cd)
    enc_wih = _pad_to(params["enc_wih"], (E_p, H_p)).astype(cd)
    enc_whh = _pad_to(params["enc_whh"], (H_p, H_p)).astype(cd)
    enc_b   = _pad_to(params["enc_b"], (1, H_p))          # biases stay f32
    dec_wih = _pad_to(params["dec_wih"], (E_p, H_p)).astype(cd)
    dec_whh = _pad_to(params["dec_whh"], (H_p, H_p)).astype(cd)
    dec_b   = _pad_to(params["dec_b"], (1, H_p))
    out_w   = _pad_to(params["out_w"], (H_p, V_p)).astype(cd)
    out_b   = _pad_to(params["out_b"], (1, V_p))

    # Padding the int token matrices is cheap; padded rows/timesteps use token 0
    # and are masked (recurrence) or sliced off (outputs).
    src_p = _pad_to(src_tokens, (B_p, Ts_p))
    tgt_p = _pad_to(tgt_tokens, (B_p, Tt_p))

    # Embedding gather directly in time-major order: transposing the tiny int
    # index matrix is free (vs. transposing the gathered (B,T,E) activations).
    # TODO(synk): fuse the gather into the projection kernel via scalar-prefetched
    # row indices (pl.Element) to avoid materializing (T,B,E) in HBM for long seqs.
    x_emb = emb_src[src_p.T]                               # (Ts_p, B_p, E_p) bf16
    y_emb = emb_tgt[tgt_p.T]                               # (Tt_p, B_p, E_p) bf16

    # 1) Hoisted input projections: large fully-parallel matmuls, bf16 outputs
    #    so the recurrence streams half the bytes.
    xw = matmul_bias(x_emb.reshape(Ts_p * B_p, E_p), enc_wih, enc_b,
                     out_dtype=cd).reshape(Ts_p, B_p, H_p)
    yw = matmul_bias(y_emb.reshape(Tt_p * B_p, E_p), dec_wih, dec_b,
                     out_dtype=cd).reshape(Tt_p, B_p, H_p)

    # 2) Serial recurrences (latency-bound): only h @ W_hh + tanh per step.
    #    Encoder emits ONLY its final hidden state.
    h0 = jnp.zeros((B_p, H_p), jnp.float32)
    h_enc = rnn_scan(xw, h0, enc_whh, t_actual=T_src, last_only=True)
    dec_h = rnn_scan(yw, h_enc, dec_whh, t_actual=T_tgt, last_only=False,
                     out_dtype=cd)                         # (Tt_p, B_p, H_p) bf16

    # 3) Vocab projection: reorder the SMALL bf16 (T,B,H) hidden tensor to
    #    batch-major first, so logits come out (B, T, V) directly and the large
    #    logits tensor is never transposed.
    dec_h_bt = jnp.transpose(dec_h, (1, 0, 2)).reshape(B_p * Tt_p, H_p)
    logits = matmul_bias(dec_h_bt, out_w, out_b, out_dtype=jnp.float32,
                         tm_target=1024)
    logits = logits.reshape(B_p, Tt_p, V_p)
    return logits[:B, :T_tgt, :V]                          # (B, T_tgt, V) f32


def seq2seq_forward_ref(params, src_tokens, tgt_tokens):
    """Pure-JAX f32 reference (lax.scan) for correctness checking."""
    x_emb = jnp.transpose(params["emb_src"][src_tokens], (1, 0, 2))
    y_emb = jnp.transpose(params["emb_tgt"][tgt_tokens], (1, 0, 2))
    B = src_tokens.shape[0]
    H = params["enc_whh"].shape[0]

    def enc_step(h, x_t):
        h = jnp.tanh(x_t @ params["enc_wih"] + h @ params["enc_whh"] + params["enc_b"])
        return h, None

    h_enc, _ = jax.lax.scan(enc_step, jnp.zeros((B, H), jnp.float32), x_emb)

    def dec_step(h, y_t):
        h = jnp.tanh(y_t @ params["dec_wih"] + h @ params["dec_whh"] + params["dec_b"])
        return h, h @ params["out_w"] + params["out_b"]

    _, logits = jax.lax.scan(dec_step, h_enc, y_emb)
    return jnp.transpose(logits, (1, 0, 2))


# TODO(synk): BaseSeq2Seq.generate is an abstract autoregressive-decode hook;
# greedy decoding would re-invoke the recurrence/projection kernels step-by-step
# and is not part of the teacher-forced forward hot path implemented here.

if __name__ == "__main__":
    B, T_SRC, T_TGT = 2, 8, 8
    SRC_VOCAB, TGT_VOCAB = 16, 16
    EMB, HID = 32, 32

    key = jax.random.PRNGKey(0)
    kp, ks, kt = jax.random.split(key, 3)
    params = init_params(kp, SRC_VOCAB, TGT_VOCAB, EMB, HID)

    src = jax.random.randint(ks, (B, T_SRC), 0, SRC_VOCAB, dtype=jnp.int32)
    tgt = jax.random.randint(kt, (B, T_TGT), 0, TGT_VOCAB, dtype=jnp.int32)

    fwd = jax.jit(seq2seq_forward)
    logits = jax.block_until_ready(fwd(params, src, tgt))

    ref = seq2seq_forward_ref(params, src, tgt)
    assert logits.shape == (B, T_TGT, TGT_VOCAB)
    # bf16 matmul operands with f32 accumulation -> loosened tolerance.
    err = float(jnp.max(jnp.abs(logits - ref)))
    assert jnp.allclose(logits, ref, atol=2e-2, rtol=2e-2), err

    _ = count_parameters(params)  # exercises BaseSeq2Seq.count_parameters analogue
    print("KERNEL_OK")
</pallas_src>

<mosaic_0001>
module attributes {stable_mosaic.version = 11 : i64} {
  func.func @_matmul_bias_kernel(%arg0: i32, %arg1: i32, %arg2: memref<128x128xbf16, #tpu.memory_space<vmem>>, %arg3: memref<128x128xbf16, #tpu.memory_space<vmem>>, %arg4: memref<1x128xf32, #tpu.memory_space<vmem>>, %arg5: memref<128x128xbf16, #tpu.memory_space<vmem>>) attributes {dimension_semantics = [#tpu.dimension_semantics<parallel>, #tpu.dimension_semantics<parallel>], iteration_bounds = array<i64: 1, 1>, scalar_prefetch = 0 : i64, scratch_operands = 0 : i64, tpu.core_type = #tpu.core_type<tc>, window_params = [{transform_indices = @transform_0, window_bounds = array<i64: 128, 128>}, {transform_indices = @transform_1, window_bounds = array<i64: 128, 128>}, {transform_indices = @transform_2, window_bounds = array<i64: 1, 128>}, {transform_indices = @transform_3, window_bounds = array<i64: 128, 128>}]} {
    %c0 = arith.constant 0 : index
    %c0_0 = arith.constant 0 : index
    %0 = vector.load %arg2[%c0, %c0_0] : memref<128x128xbf16, #tpu.memory_space<vmem>>, vector<128x128xbf16>
    %c0_1 = arith.constant 0 : index
    %c0_2 = arith.constant 0 : index
    %1 = vector.load %arg3[%c0_1, %c0_2] : memref<128x128xbf16, #tpu.memory_space<vmem>>, vector<128x128xbf16>
    %cst = arith.constant dense<0.000000e+00> : vector<128x128xf32>
    %2 = tpu.matmul %0, %1, %cst {dimension_numbers = #tpu.dot_dimension_numbers<[1], [0], [0], [1], [0, 0, 1, 1], [], []>} : vector<128x128xbf16>, vector<128x128xbf16>, vector<128x128xf32> -> vector<128x128xf32>
    %c0_3 = arith.constant 0 : index
    %c0_4 = arith.constant 0 : index
    %3 = vector.load %arg4[%c0_3, %c0_4] : memref<1x128xf32, #tpu.memory_space<vmem>>, vector<1x128xf32>
    %4 = vector.broadcast %3 : vector<1x128xf32> to vector<128x128xf32>
    %5 = arith.addf %2, %4 : vector<128x128xf32>
    %6 = arith.truncf %5 : vector<128x128xf32> to vector<128x128xbf16>
    %c0_5 = arith.constant 0 : index
    %c0_6 = arith.constant 0 : index
    %7 = vector.load %arg5[%c0_5, %c0_6] : memref<128x128xbf16, #tpu.memory_space<vmem>>, vector<128x128xbf16>
    tpu.vector_store %arg5[%c0_5, %c0_6], %6 {strides = array<i32>} : memref<128x128xbf16, #tpu.memory_space<vmem>>, vector<128x128xbf16>,
    return
  }
  func.func @transform_0(%arg0: i32, %arg1: i32) -> (i32, i32) {
    %c0_i32 = arith.constant 0 : i32
    %c0_i32_0 = arith.constant 0 : i32
    return %arg0, %c0_i32 : i32, i32
  }
  func.func @transform_1(%arg0: i32, %arg1: i32) -> (i32, i32) {
    %c0_i32 = arith.constant 0 : i32
    %c0_i32_0 = arith.constant 0 : i32
    return %c0_i32, %arg1 : i32, i32
  }
  func.func @transform_2(%arg0: i32, %arg1: i32) -> (i32, i32) {
    %c0_i32 = arith.constant 0 : i32
    %c0_i32_0 = arith.constant 0 : i32
    return %c0_i32, %arg1 : i32, i32
  }
  func.func @transform_3(%arg0: i32, %arg1: i32) -> (i32, i32) {
    %c0_i32 = arith.constant 0 : i32
    return %arg0, %arg1 : i32, i32
  }
}

module attributes {stable_mosaic.version = 11 : i64} {
  func.func @kernel(%arg0: i32, %arg1: i32, %arg2: memref<8x16x128xbf16, #tpu.memory_space<vmem>>, %arg3: memref<16x128xf32, #tpu.memory_space<vmem>>, %arg4: memref<128x128xbf16, #tpu.memory_space<vmem>>, %arg5: memref<8x16x128xbf16, #tpu.memory_space<vmem>>, %arg6: memref<16x128xf32, #tpu.memory_space<vmem>>) attributes {dimension_semantics = [#tpu.dimension_semantics<parallel>, #tpu.dimension_semantics<arbitrary>], iteration_bounds = array<i64: 1, 1>, scalar_prefetch = 0 : i64, scratch_operands = 1 : i64, tpu.core_type = #tpu.core_type<tc>, window_params = [{transform_indices = @transform_0, window_bounds = array<i64: 8, 16, 128>}, {transform_indices = @transform_1, window_bounds = array<i64: 16, 128>}, {pipeline_mode = #tpu.pipeline_mode<synchronous>, transform_indices = @transform_2, window_bounds = array<i64: 128, 128>}, {transform_indices = @transform_3, window_bounds = array<i64: 8, 16, 128>}]} {
    %c0_i32 = arith.constant 0 : i32
    %0 = arith.cmpi eq, %arg1, %c0_i32 : i32
    %1 = arith.extui %0 : i1 to i32
    %c0_i32_0 = arith.constant 0 : i32
    %2 = arith.cmpi ne, %1, %c0_i32_0 : i32
    scf.if %2 {
      %c0_54 = arith.constant 0 : index
      %c0_55 = arith.constant 0 : index
      %94 = vector.load %arg3[%c0_54, %c0_55] : memref<16x128xf32, #tpu.memory_space<vmem>>, vector<16x128xf32>
      %c0_56 = arith.constant 0 : index
      %c0_57 = arith.constant 0 : index
      %95 = vector.load %arg6[%c0_56, %c0_57] : memref<16x128xf32, #tpu.memory_space<vmem>>, vector<16x128xf32>
      tpu.vector_store %arg6[%c0_56, %c0_57], %94 {strides = array<i32>} : memref<16x128xf32, #tpu.memory_space<vmem>>, vector<16x128xf32>,
    } else {
    }
    %c0 = arith.constant 0 : index
    %c0_1 = arith.constant 0 : index
    %3 = vector.load %arg6[%c0, %c0_1] : memref<16x128xf32, #tpu.memory_space<vmem>>, vector<16x128xf32>
    %c0_2 = arith.constant 0 : index
    %c0_3 = arith.constant 0 : index
    %4 = vector.load %arg4[%c0_2, %c0_3] : memref<128x128xbf16, #tpu.memory_space<vmem>>, vector<128x128xbf16>
    %c0_4 = arith.constant 0 : index
    %c0_5 = arith.constant 0 : index
    %c0_6 = arith.constant 0 : index
    %5 = vector.load %arg2[%c0_4, %c0_5, %c0_6] : memref<8x16x128xbf16, #tpu.memory_space<vmem>>, vector<1x16x128xbf16>
    %6 = vector.shape_cast %5 : vector<1x16x128xbf16> to vector<16x128xbf16>
    %7 = arith.extf %6 : vector<16x128xbf16> to vector<16x128xf32>
    %8 = arith.truncf %3 : vector<16x128xf32> to vector<16x128xbf16>
    %cst = arith.constant dense<0.000000e+00> : vector<16x128xf32>
    %9 = tpu.matmul %8, %4, %cst {dimension_numbers = #tpu.dot_dimension_numbers<[1], [0], [0], [1], [0, 0, 1, 1], [], []>} : vector<16x128xbf16>, vector<128x128xbf16>, vector<16x128xf32> -> vector<16x128xf32>
    %10 = arith.addf %7, %9 : vector<16x128xf32>
    %11 = math.tanh %10 : vector<16x128xf32>
    %12 = arith.truncf %11 : vector<16x128xf32> to vector<16x128xbf16>
    %c0_7 = arith.constant 0 : index
    %c0_8 = arith.constant 0 : index
    %c0_9 = arith.constant 0 : index
    %13 = vector.load %arg5[%c0_7, %c0_8, %c0_9] : memref<8x16x128xbf16, #tpu.memory_space<vmem>>, vector<1x16x128xbf16>
    %14 = vector.shape_cast %13 : vector<1x16x128xbf16> to vector<16x128xbf16>
    %15 = vector.shape_cast %12 : vector<16x128xbf16> to vector<1x16x128xbf16>
    tpu.vector_store %arg5[%c0_7, %c0_8, %c0_9], %15 {strides = array<i32>} : memref<8x16x128xbf16, #tpu.memory_space<vmem>>, vector<1x16x128xbf16>,
    %c1 = arith.constant 1 : index
    %c0_10 = arith.constant 0 : index
    %c0_11 = arith.constant 0 : index
    %16 = vector.load %arg2[%c1, %c0_10, %c0_11] : memref<8x16x128xbf16, #tpu.memory_space<vmem>>, vector<1x16x128xbf16>
    %17 = vector.shape_cast %16 : vector<1x16x128xbf16> to vector<16x128xbf16>
    %18 = arith.extf %17 : vector<16x128xbf16> to vector<16x128xf32>
    %19 = arith.truncf %11 : vector<16x128xf32> to vector<16x128xbf16>
    %cst_12 = arith.constant dense<0.000000e+00> : vector<16x128xf32>
    %20 = tpu.matmul %19, %4, %cst_12 {dimension_numbers = #tpu.dot_dimension_numbers<[1], [0], [0], [1], [0, 0, 1, 1], [], []>} : vector<16x128xbf16>, vector<128x128xbf16>, vector<16x128xf32> -> vector<16x128xf32>
    %21 = arith.addf %18, %20 : vector<16x128xf32>
    %22 = math.tanh %21 : vector<16x128xf32>
    %23 = arith.truncf %22 : vector<16x128xf32> to vector<16x128xbf16>
    %c1_13 = arith.constant 1 : index
    %c0_14 = arith.constant 0 : index
    %c0_15 = arith.constant 0 : index
    %24 = vector.load %arg5[%c1_13, %c0_14, %c0_15] : memref<8x16x128xbf16, #tpu.memory_space<vmem>>, vector<1x16x128xbf16>
    %25 = vector.shape_cast %24 : vector<1x16x128xbf16> to vector<16x128xbf16>
    %26 = vector.shape_cast %23 : vector<16x128xbf16> to vector<1x16x128xbf16>
    tpu.vector_store %arg5[%c1_13, %c0_14, %c0_15], %26 {strides = array<i32>} : memref<8x16x128xbf16, #tpu.memory_space<vmem>>, vector<1x16x128xbf16>,
    %c2 = arith.constant 2 : index
    %c0_16 = arith.constant 0 : index
    %c0_17 = arith.constant 0 : index
    %27 = vector.load %arg2[%c2, %c0_16, %c0_17] : memref<8x16x128xbf16, #tpu.memory_space<vmem>>, vector<1x16x128xbf16>
    %28 = vector.shape_cast %27 : vector<1x16x128xbf16> to vector<16x128xbf16>
    %29 = arith.extf %28 : vector<16x128xbf16> to vector<16x128xf32>
    %30 = arith.truncf %22 : vector<16x128xf32> to vector<16x128xbf16>
    %cst_18 = arith.constant dense<0.000000e+00> : vector<16x128xf32>
    %31 = tpu.matmul %30, %4, %cst_18 {dimension_numbers = #tpu.dot_dimension_numbers<[1], [0], [0], [1], [0, 0, 1, 1], [], []>} : vector<16x128xbf16>, vector<128x128xbf16>, vector<16x128xf32> -> vector<16x128xf32>
    %32 = arith.addf %29, %31 : vector<16x128xf32>
    %33 = math.tanh %32 : vector<16x128xf32>
    %34 = arith.truncf %33 : vector<16x128xf32> to vector<16x128xbf16>
    %c2_19 = arith.constant 2 : index
    %c0_20 = arith.constant 0 : index
    %c0_21 = arith.constant 0 : index
    %35 = vector.load %arg5[%c2_19, %c0_20, %c0_21] : memref<8x16x128xbf16, #tpu.memory_space<vmem>>, vector<1x16x128xbf16>
    %36 = vector.shape_cast %35 : vector<1x16x128xbf16> to vector<16x128xbf16>
    %37 = vector.shape_cast %34 : vector<16x128xbf16> to vector<1x16x128xbf16>
    tpu.vector_store %arg5[%c2_19, %c0_20, %c0_21], %37 {strides = array<i32>} : memref<8x16x128xbf16, #tpu.memory_space<vmem>>, vector<1x16x128xbf16>,
    %c3 = arith.constant 3 : index
    %c0_22 = arith.constant 0 : index
    %c0_23 = arith.constant 0 : index
    %38 = vector.load %arg2[%c3, %c0_22, %c0_23] : memref<8x16x128xbf16, #tpu.memory_space<vmem>>, vector<1x16x128xbf16>
    %39 = vector.shape_cast %38 : vector<1x16x128xbf16> to vector<16x128xbf16>
    %40 = arith.extf %39 : vector<16x128xbf16> to vector<16x128xf32>
    %41 = arith.truncf %33 : vector<16x128xf32> to vector<16x128xbf16>
    %cst_24 = arith.constant dense<0.000000e+00> : vector<16x128xf32>
    %42 = tpu.matmul %41, %4, %cst_24 {dimension_numbers = #tpu.dot_dimension_numbers<[1], [0], [0], [1], [0, 0, 1, 1], [], []>} : vector<16x128xbf16>, vector<128x128xbf16>, vector<16x128xf32> -> vector<16x128xf32>
    %43 = arith.addf %40, %42 : vector<16x128xf32>
    %44 = math.tanh %43 : vector<16x128xf32>
    %45 = arith.truncf %44 : vector<16x128xf32> to vector<16x128xbf16>
    %c3_25 = arith.constant 3 : index
    %c0_26 = arith.constant 0 : index
    %c0_27 = arith.constant 0 : index
    %46 = vector.load %arg5[%c3_25, %c0_26, %c0_27] : memref<8x16x128xbf16, #tpu.memory_space<vmem>>, vector<1x16x128xbf16>
    %47 = vector.shape_cast %46 : vector<1x16x128xbf16> to vector<16x128xbf16>
    %48 = vector.shape_cast %45 : vector<16x128xbf16> to vector<1x16x128xbf16>
    tpu.vector_store %arg5[%c3_25, %c0_26, %c0_27], %48 {strides = array<i32>} : memref<8x16x128xbf16, #tpu.memory_space<vmem>>, vector<1x16x128xbf16>,
    %c4 = arith.constant 4 : index
    %c0_28 = arith.constant 0 : index
    %c0_29 = arith.constant 0 : index
    %49 = vector.load %arg2[%c4, %c0_28, %c0_29] : memref<8x16x128xbf16, #tpu.memory_space<vmem>>, vector<1x16x128xbf16>
    %50 = vector.shape_cast %49 : vector<1x16x128xbf16> to vector<16x128xbf16>
    %51 = arith.extf %50 : vector<16x128xbf16> to vector<16x128xf32>
    %52 = arith.truncf %44 : vector<16x128xf32> to vector<16x128xbf16>
    %cst_30 = arith.constant dense<0.000000e+00> : vector<16x128xf32>
    %53 = tpu.matmul %52, %4, %cst_30 {dimension_numbers = #tpu.dot_dimension_numbers<[1], [0], [0], [1], [0, 0, 1, 1], [], []>} : vector<16x128xbf16>, vector<128x128xbf16>, vector<16x128xf32> -> vector<16x128xf32>
    %54 = arith.addf %51, %53 : vector<16x128xf32>
    %55 = math.tanh %54 : vector<16x128xf32>
    %56 = arith.truncf %55 : vector<16x128xf32> to vector<16x128xbf16>
    %c4_31 = arith.constant 4 : index
    %c0_32 = arith.constant 0 : index
    %c0_33 = arith.constant 0 : index
    %57 = vector.load %arg5[%c4_31, %c0_32, %c0_33] : memref<8x16x128xbf16, #tpu.memory_space<vmem>>, vector<1x16x128xbf16>
    %58 = vector.shape_cast %57 : vector<1x16x128xbf16> to vector<16x128xbf16>
    %59 = vector.shape_cast %56 : vector<16x128xbf16> to vector<1x16x128xbf16>
    tpu.vector_store %arg5[%c4_31, %c0_32, %c0_33], %59 {strides = array<i32>} : memref<8x16x128xbf16, #tpu.memory_space<vmem>>, vector<1x16x128xbf16>,
    %c5 = arith.constant 5 : index
    %c0_34 = arith.constant 0 : index
    %c0_35 = arith.constant 0 : index
    %60 = vector.load %arg2[%c5, %c0_34, %c0_35] : memref<8x16x128xbf16, #tpu.memory_space<vmem>>, vector<1x16x128xbf16>
    %61 = vector.shape_cast %60 : vector<1x16x128xbf16> to vector<16x128xbf16>
    %62 = arith.extf %61 : vector<16x128xbf16> to vector<16x128xf32>
    %63 = arith.truncf %55 : vector<16x128xf32> to vector<16x128xbf16>
    %cst_36 = arith.constant dense<0.000000e+00> : vector<16x128xf32>
    %64 = tpu.matmul %63, %4, %cst_36 {dimension_numbers = #tpu.dot_dimension_numbers<[1], [0], [0], [1], [0, 0, 1, 1], [], []>} : vector<16x128xbf16>, vector<128x128xbf16>, vector<16x128xf32> -> vector<16x128xf32>
    %65 = arith.addf %62, %64 : vector<16x128xf32>
    %66 = math.tanh %65 : vector<16x128xf32>
    %67 = arith.truncf %66 : vector<16x128xf32> to vector<16x128xbf16>
    %c5_37 = arith.constant 5 : index
    %c0_38 = arith.constant 0 : index
    %c0_39 = arith.constant 0 : index
    %68 = vector.load %arg5[%c5_37, %c0_38, %c0_39] : memref<8x16x128xbf16, #tpu.memory_space<vmem>>, vector<1x16x128xbf16>
    %69 = vector.shape_cast %68 : vector<1x16x128xbf16> to vector<16x128xbf16>
    %70 = vector.shape_cast %67 : vector<16x128xbf16> to vector<1x16x128xbf16>
    tpu.vector_store %arg5[%c5_37, %c0_38, %c0_39], %70 {strides = array<i32>} : memref<8x16x128xbf16, #tpu.memory_space<vmem>>, vector<1x16x128xbf16>,
    %c6 = arith.constant 6 : index
    %c0_40 = arith.constant 0 : index
    %c0_41 = arith.constant 0 : index
    %71 = vector.load %arg2[%c6, %c0_40, %c0_41] : memref<8x16x128xbf16, #tpu.memory_space<vmem>>, vector<1x16x128xbf16>
    %72 = vector.shape_cast %71 : vector<1x16x128xbf16> to vector<16x128xbf16>
    %73 = arith.extf %72 : vector<16x128xbf16> to vector<16x128xf32>
    %74 = arith.truncf %66 : vector<16x128xf32> to vector<16x128xbf16>
    %cst_42 = arith.constant dense<0.000000e+00> : vector<16x128xf32>
    %75 = tpu.matmul %74, %4, %cst_42 {dimension_numbers = #tpu.dot_dimension_numbers<[1], [0], [0], [1], [0, 0, 1, 1], [], []>} : vector<16x128xbf16>, vector<128x128xbf16>, vector<16x128xf32> -> vector<16x128xf32>
    %76 = arith.addf %73, %75 : vector<16x128xf32>
    %77 = math.tanh %76 : vector<16x128xf32>
    %78 = arith.truncf %77 : vector<16x128xf32> to vector<16x128xbf16>
    %c6_43 = arith.constant 6 : index
    %c0_44 = arith.constant 0 : index
    %c0_45 = arith.constant 0 : index
    %79 = vector.load %arg5[%c6_43, %c0_44, %c0_45] : memref<8x16x128xbf16, #tpu.memory_space<vmem>>, vector<1x16x128xbf16>
    %80 = vector.shape_cast %79 : vector<1x16x128xbf16> to vector<16x128xbf16>
    %81 = vector.shape_cast %78 : vector<16x128xbf16> to vector<1x16x128xbf16>
    tpu.vector_store %arg5[%c6_43, %c0_44, %c0_45], %81 {strides = array<i32>} : memref<8x16x128xbf16, #tpu.memory_space<vmem>>, vector<1x16x128xbf16>,
    %c7 = arith.constant 7 : index
    %c0_46 = arith.constant 0 : index
    %c0_47 = arith.constant 0 : index
    %82 = vector.load %arg2[%c7, %c0_46, %c0_47] : memref<8x16x128xbf16, #tpu.memory_space<vmem>>, vector<1x16x128xbf16>
    %83 = vector.shape_cast %82 : vector<1x16x128xbf16> to vector<16x128xbf16>
    %84 = arith.extf %83 : vector<16x128xbf16> to vector<16x128xf32>
    %85 = arith.truncf %77 : vector<16x128xf32> to vector<16x128xbf16>
    %cst_48 = arith.constant dense<0.000000e+00> : vector<16x128xf32>
    %86 = tpu.matmul %85, %4, %cst_48 {dimension_numbers = #tpu.dot_dimension_numbers<[1], [0], [0], [1], [0, 0, 1, 1], [], []>} : vector<16x128xbf16>, vector<128x128xbf16>, vector<16x128xf32> -> vector<16x128xf32>
    %87 = arith.addf %84, %86 : vector<16x128xf32>
    %88 = math.tanh %87 : vector<16x128xf32>
    %89 = arith.truncf %88 : vector<16x128xf32> to vector<16x128xbf16>
    %c7_49 = arith.constant 7 : index
    %c0_50 = arith.constant 0 : index
    %c0_51 = arith.constant 0 : index
    %90 = vector.load %arg5[%c7_49, %c0_50, %c0_51] : memref<8x16x128xbf16, #tpu.memory_space<vmem>>, vector<1x16x128xbf16>
    %91 = vector.shape_cast %90 : vector<1x16x128xbf16> to vector<16x128xbf16>
    %92 = vector.shape_cast %89 : vector<16x128xbf16> to vector<1x16x128xbf16>
    tpu.vector_store %arg5[%c7_49, %c0_50, %c0_51], %92 {strides = array<i32>} : memref<8x16x128xbf16, #tpu.memory_space<vmem>>, vector<1x16x128xbf16>,
    %c0_52 = arith.constant 0 : index
    %c0_53 = arith.constant 0 : index
    %93 = vector.load %arg6[%c0_52, %c0_53] : memref<16x128xf32, #tpu.memory_space<vmem>>, vector<16x128xf32>
    tpu.vector_store %arg6[%c0_52, %c0_53], %88 {strides = array<i32>} : memref<16x128xf32, #tpu.memory_space<vmem>>, vector<16x128xf32>,
    return
  }
  func.func @transform_0(%arg0: i32, %arg1: i32) -> (i32, i32, i32) {
    %c0_i32 = arith.constant 0 : i32
    %c0_i32_0 = arith.constant 0 : i32
    return %arg1, %arg0, %c0_i32 : i32, i32, i32
  }
  func.func @transform_1(%arg0: i32, %arg1: i32) -> (i32, i32) {
    %c0_i32 = arith.constant 0 : i32
    %c0_i32_0 = arith.constant 0 : i32
    return %arg0, %c0_i32 : i32, i32
  }
  func.func @transform_2(%arg0: i32, %arg1: i32) -> (i32, i32) {
    %c0_i32 = arith.constant 0 : i32
    %c0_i32_0 = arith.constant 0 : i32
    %c0_i32_1 = arith.constant 0 : i32
    return %c0_i32, %c0_i32_0 : i32, i32
  }
  func.func @transform_3(%arg0: i32, %arg1: i32) -> (i32, i32, i32) {
    %c0_i32 = arith.constant 0 : i32
    %c0_i32_0 = arith.constant 0 : i32
    return %arg1, %arg0, %c0_i32 : i32, i32, i32
  }
}

module attributes {stable_mosaic.version = 11 : i64} {
  func.func @kernel(%arg0: i32, %arg1: i32, %arg2: memref<8x16x128xbf16, #tpu.memory_space<vmem>>, %arg3: memref<16x128xf32, #tpu.memory_space<vmem>>, %arg4: memref<128x128xbf16, #tpu.memory_space<vmem>>, %arg5: memref<16x128xf32, #tpu.memory_space<vmem>>, %arg6: memref<16x128xf32, #tpu.memory_space<vmem>>) attributes {dimension_semantics = [#tpu.dimension_semantics<parallel>, #tpu.dimension_semantics<arbitrary>], iteration_bounds = array<i64: 1, 1>, scalar_prefetch = 0 : i64, scratch_operands = 1 : i64, tpu.core_type = #tpu.core_type<tc>, window_params = [{transform_indices = @transform_0, window_bounds = array<i64: 8, 16, 128>}, {transform_indices = @transform_1, window_bounds = array<i64: 16, 128>}, {pipeline_mode = #tpu.pipeline_mode<synchronous>, transform_indices = @transform_2, window_bounds = array<i64: 128, 128>}, {transform_indices = @transform_3, window_bounds = array<i64: 16, 128>}]} {
    %c0_i32 = arith.constant 0 : i32
    %0 = arith.cmpi eq, %arg1, %c0_i32 : i32
    %1 = arith.extui %0 : i1 to i32
    %c0_i32_0 = arith.constant 0 : i32
    %2 = arith.cmpi ne, %1, %c0_i32_0 : i32
    scf.if %2 {
      %c0_32 = arith.constant 0 : index
      %c0_33 = arith.constant 0 : index
      %65 = vector.load %arg3[%c0_32, %c0_33] : memref<16x128xf32, #tpu.memory_space<vmem>>, vector<16x128xf32>
      %c0_34 = arith.constant 0 : index
      %c0_35 = arith.constant 0 : index
      %66 = vector.load %arg6[%c0_34, %c0_35] : memref<16x128xf32, #tpu.memory_space<vmem>>, vector<16x128xf32>
      tpu.vector_store %arg6[%c0_34, %c0_35], %65 {strides = array<i32>} : memref<16x128xf32, #tpu.memory_space<vmem>>, vector<16x128xf32>,
    } else {
    }
    %c0 = arith.constant 0 : index
    %c0_1 = arith.constant 0 : index
    %3 = vector.load %arg6[%c0, %c0_1] : memref<16x128xf32, #tpu.memory_space<vmem>>, vector<16x128xf32>
    %c0_2 = arith.constant 0 : index
    %c0_3 = arith.constant 0 : index
    %4 = vector.load %arg4[%c0_2, %c0_3] : memref<128x128xbf16, #tpu.memory_space<vmem>>, vector<128x128xbf16>
    %c0_4 = arith.constant 0 : index
    %c0_5 = arith.constant 0 : index
    %c0_6 = arith.constant 0 : index
    %5 = vector.load %arg2[%c0_4, %c0_5, %c0_6] : memref<8x16x128xbf16, #tpu.memory_space<vmem>>, vector<1x16x128xbf16>
    %6 = vector.shape_cast %5 : vector<1x16x128xbf16> to vector<16x128xbf16>
    %7 = arith.extf %6 : vector<16x128xbf16> to vector<16x128xf32>
    %8 = arith.truncf %3 : vector<16x128xf32> to vector<16x128xbf16>
    %cst = arith.constant dense<0.000000e+00> : vector<16x128xf32>
    %9 = tpu.matmul %8, %4, %cst {dimension_numbers = #tpu.dot_dimension_numbers<[1], [0], [0], [1], [0, 0, 1, 1], [], []>} : vector<16x128xbf16>, vector<128x128xbf16>, vector<16x128xf32> -> vector<16x128xf32>
    %10 = arith.addf %7, %9 : vector<16x128xf32>
    %11 = math.tanh %10 : vector<16x128xf32>
    %c1 = arith.constant 1 : index
    %c0_7 = arith.constant 0 : index
    %c0_8 = arith.constant 0 : index
    %12 = vector.load %arg2[%c1, %c0_7, %c0_8] : memref<8x16x128xbf16, #tpu.memory_space<vmem>>, vector<1x16x128xbf16>
    %13 = vector.shape_cast %12 : vector<1x16x128xbf16> to vector<16x128xbf16>
    %14 = arith.extf %13 : vector<16x128xbf16> to vector<16x128xf32>
    %15 = arith.truncf %11 : vector<16x128xf32> to vector<16x128xbf16>
    %cst_9 = arith.constant dense<0.000000e+00> : vector<16x128xf32>
    %16 = tpu.matmul %15, %4, %cst_9 {dimension_numbers = #tpu.dot_dimension_numbers<[1], [0], [0], [1], [0, 0, 1, 1], [], []>} : vector<16x128xbf16>, vector<128x128xbf16>, vector<16x128xf32> -> vector<16x128xf32>
    %17 = arith.addf %14, %16 : vector<16x128xf32>
    %18 = math.tanh %17 : vector<16x128xf32>
    %c2 = arith.constant 2 : index
    %c0_10 = arith.constant 0 : index
    %c0_11 = arith.constant 0 : index
    %19 = vector.load %arg2[%c2, %c0_10, %c0_11] : memref<8x16x128xbf16, #tpu.memory_space<vmem>>, vector<1x16x128xbf16>
    %20 = vector.shape_cast %19 : vector<1x16x128xbf16> to vector<16x128xbf16>
    %21 = arith.extf %20 : vector<16x128xbf16> to vector<16x128xf32>
    %22 = arith.truncf %18 : vector<16x128xf32> to vector<16x128xbf16>
    %cst_12 = arith.constant dense<0.000000e+00> : vector<16x128xf32>
    %23 = tpu.matmul %22, %4, %cst_12 {dimension_numbers = #tpu.dot_dimension_numbers<[1], [0], [0], [1], [0, 0, 1, 1], [], []>} : vector<16x128xbf16>, vector<128x128xbf16>, vector<16x128xf32> -> vector<16x128xf32>
    %24 = arith.addf %21, %23 : vector<16x128xf32>
    %25 = math.tanh %24 : vector<16x128xf32>
    %c3 = arith.constant 3 : index
    %c0_13 = arith.constant 0 : index
    %c0_14 = arith.constant 0 : index
    %26 = vector.load %arg2[%c3, %c0_13, %c0_14] : memref<8x16x128xbf16, #tpu.memory_space<vmem>>, vector<1x16x128xbf16>
    %27 = vector.shape_cast %26 : vector<1x16x128xbf16> to vector<16x128xbf16>
    %28 = arith.extf %27 : vector<16x128xbf16> to vector<16x128xf32>
    %29 = arith.truncf %25 : vector<16x128xf32> to vector<16x128xbf16>
    %cst_15 = arith.constant dense<0.000000e+00> : vector<16x128xf32>
    %30 = tpu.matmul %29, %4, %cst_15 {dimension_numbers = #tpu.dot_dimension_numbers<[1], [0], [0], [1], [0, 0, 1, 1], [], []>} : vector<16x128xbf16>, vector<128x128xbf16>, vector<16x128xf32> -> vector<16x128xf32>
    %31 = arith.addf %28, %30 : vector<16x128xf32>
    %32 = math.tanh %31 : vector<16x128xf32>
    %c4 = arith.constant 4 : index
    %c0_16 = arith.constant 0 : index
    %c0_17 = arith.constant 0 : index
    %33 = vector.load %arg2[%c4, %c0_16, %c0_17] : memref<8x16x128xbf16, #tpu.memory_space<vmem>>, vector<1x16x128xbf16>
    %34 = vector.shape_cast %33 : vector<1x16x128xbf16> to vector<16x128xbf16>
    %35 = arith.extf %34 : vector<16x128xbf16> to vector<16x128xf32>
    %36 = arith.truncf %32 : vector<16x128xf32> to vector<16x128xbf16>
    %cst_18 = arith.constant dense<0.000000e+00> : vector<16x128xf32>
    %37 = tpu.matmul %36, %4, %cst_18 {dimension_numbers = #tpu.dot_dimension_numbers<[1], [0], [0], [1], [0, 0, 1, 1], [], []>} : vector<16x128xbf16>, vector<128x128xbf16>, vector<16x128xf32> -> vector<16x128xf32>
    %38 = arith.addf %35, %37 : vector<16x128xf32>
    %39 = math.tanh %38 : vector<16x128xf32>
    %c5 = arith.constant 5 : index
    %c0_19 = arith.constant 0 : index
    %c0_20 = arith.constant 0 : index
    %40 = vector.load %arg2[%c5, %c0_19, %c0_20] : memref<8x16x128xbf16, #tpu.memory_space<vmem>>, vector<1x16x128xbf16>
    %41 = vector.shape_cast %40 : vector<1x16x128xbf16> to vector<16x128xbf16>
    %42 = arith.extf %41 : vector<16x128xbf16> to vector<16x128xf32>
    %43 = arith.truncf %39 : vector<16x128xf32> to vector<16x128xbf16>
    %cst_21 = arith.constant dense<0.000000e+00> : vector<16x128xf32>
    %44 = tpu.matmul %43, %4, %cst_21 {dimension_numbers = #tpu.dot_dimension_numbers<[1], [0], [0], [1], [0, 0, 1, 1], [], []>} : vector<16x128xbf16>, vector<128x128xbf16>, vector<16x128xf32> -> vector<16x128xf32>
    %45 = arith.addf %42, %44 : vector<16x128xf32>
    %46 = math.tanh %45 : vector<16x128xf32>
    %c6 = arith.constant 6 : index
    %c0_22 = arith.constant 0 : index
    %c0_23 = arith.constant 0 : index
    %47 = vector.load %arg2[%c6, %c0_22, %c0_23] : memref<8x16x128xbf16, #tpu.memory_space<vmem>>, vector<1x16x128xbf16>
    %48 = vector.shape_cast %47 : vector<1x16x128xbf16> to vector<16x128xbf16>
    %49 = arith.extf %48 : vector<16x128xbf16> to vector<16x128xf32>
    %50 = arith.truncf %46 : vector<16x128xf32> to vector<16x128xbf16>
    %cst_24 = arith.constant dense<0.000000e+00> : vector<16x128xf32>
    %51 = tpu.matmul %50, %4, %cst_24 {dimension_numbers = #tpu.dot_dimension_numbers<[1], [0], [0], [1], [0, 0, 1, 1], [], []>} : vector<16x128xbf16>, vector<128x128xbf16>, vector<16x128xf32> -> vector<16x128xf32>
    %52 = arith.addf %49, %51 : vector<16x128xf32>
    %53 = math.tanh %52 : vector<16x128xf32>
    %c7 = arith.constant 7 : index
    %c0_25 = arith.constant 0 : index
    %c0_26 = arith.constant 0 : index
    %54 = vector.load %arg2[%c7, %c0_25, %c0_26] : memref<8x16x128xbf16, #tpu.memory_space<vmem>>, vector<1x16x128xbf16>
    %55 = vector.shape_cast %54 : vector<1x16x128xbf16> to vector<16x128xbf16>
    %56 = arith.extf %55 : vector<16x128xbf16> to vector<16x128xf32>
    %57 = arith.truncf %53 : vector<16x128xf32> to vector<16x128xbf16>
    %cst_27 = arith.constant dense<0.000000e+00> : vector<16x128xf32>
    %58 = tpu.matmul %57, %4, %cst_27 {dimension_numbers = #tpu.dot_dimension_numbers<[1], [0], [0], [1], [0, 0, 1, 1], [], []>} : vector<16x128xbf16>, vector<128x128xbf16>, vector<16x128xf32> -> vector<16x128xf32>
    %59 = arith.addf %56, %58 : vector<16x128xf32>
    %60 = math.tanh %59 : vector<16x128xf32>
    %c0_28 = arith.constant 0 : index
    %c0_29 = arith.constant 0 : index
    %61 = vector.load %arg6[%c0_28, %c0_29] : memref<16x128xf32, #tpu.memory_space<vmem>>, vector<16x128xf32>
    tpu.vector_store %arg6[%c0_28, %c0_29], %60 {strides = array<i32>} : memref<16x128xf32, #tpu.memory_space<vmem>>, vector<16x128xf32>,
    %c0_i32_30 = arith.constant 0 : i32
    %62 = arith.cmpi eq, %arg1, %c0_i32_30 : i32
    %63 = arith.extui %62 : i1 to i32
    %c0_i32_31 = arith.constant 0 : i32
    %64 = arith.cmpi ne, %63, %c0_i32_31 : i32
    scf.if %64 {
      %c0_32 = arith.constant 0 : index
      %c0_33 = arith.constant 0 : index
      %65 = vector.load %arg5[%c0_32, %c0_33] : memref<16x128xf32, #tpu.memory_space<vmem>>, vector<16x128xf32>
      tpu.vector_store %arg5[%c0_32, %c0_33], %60 {strides = array<i32>} : memref<16x128xf32, #tpu.memory_space<vmem>>, vector<16x128xf32>,
    } else {
    }
    return
  }
  func.func @transform_0(%arg0: i32, %arg1: i32) -> (i32, i32, i32) {
    %c0_i32 = arith.constant 0 : i32
    %c0_i32_0 = arith.constant 0 : i32
    return %arg1, %arg0, %c0_i32 : i32, i32, i32
  }
  func.func @transform_1(%arg0: i32, %arg1: i32) -> (i32, i32) {
    %c0_i32 = arith.constant 0 : i32
    %c0_i32_0 = arith.constant 0 : i32
    return %arg0, %c0_i32 : i32, i32
  }
  func.func @transform_2(%arg0: i32, %arg1: i32) -> (i32, i32) {
    %c0_i32 = arith.constant 0 : i32
    %c0_i32_0 = arith.constant 0 : i32
    %c0_i32_1 = arith.constant 0 : i32
    return %c0_i32, %c0_i32_0 : i32, i32
  }
  func.func @transform_3(%arg0: i32, %arg1: i32) -> (i32, i32) {
    %c0_i32 = arith.constant 0 : i32
    %c0_i32_0 = arith.constant 0 : i32
    return %arg0, %c0_i32 : i32, i32
  }
}

module attributes {stable_mosaic.version = 11 : i64} {
  func.func @_matmul_bias_kernel(%arg0: i32, %arg1: i32, %arg2: memref<128x128xbf16, #tpu.memory_space<vmem>>, %arg3: memref<128x128xbf16, #tpu.memory_space<vmem>>, %arg4: memref<1x128xf32, #tpu.memory_space<vmem>>, %arg5: memref<128x128xf32, #tpu.memory_space<vmem>>) attributes {dimension_semantics = [#tpu.dimension_semantics<parallel>, #tpu.dimension_semantics<parallel>], iteration_bounds = array<i64: 1, 1>, scalar_prefetch = 0 : i64, scratch_operands = 0 : i64, tpu.core_type = #tpu.core_type<tc>, window_params = [{transform_indices = @transform_0, window_bounds = array<i64: 128, 128>}, {transform_indices = @transform_1, window_bounds = array<i64: 128, 128>}, {transform_indices = @transform_2, window_bounds = array<i64: 1, 128>}, {transform_indices = @transform_3, window_bounds = array<i64: 128, 128>}]} {
    %c0 = arith.constant 0 : index
    %c0_0 = arith.constant 0 : index
    %0 = vector.load %arg2[%c0, %c0_0] : memref<128x128xbf16, #tpu.memory_space<vmem>>, vector<128x128xbf16>
    %c0_1 = arith.constant 0 : index
    %c0_2 = arith.constant 0 : index
    %1 = vector.load %arg3[%c0_1, %c0_2] : memref<128x128xbf16, #tpu.memory_space<vmem>>, vector<128x128xbf16>
    %cst = arith.constant dense<0.000000e+00> : vector<128x128xf32>
    %2 = tpu.matmul %0, %1, %cst {dimension_numbers = #tpu.dot_dimension_numbers<[1], [0], [0], [1], [0, 0, 1, 1], [], []>} : vector<128x128xbf16>, vector<128x128xbf16>, vector<128x128xf32> -> vector<128x128xf32>
    %c0_3 = arith.constant 0 : index
    %c0_4 = arith.constant 0 : index
    %3 = vector.load %arg4[%c0_3, %c0_4] : memref<1x128xf32, #tpu.memory_space<vmem>>, vector<1x128xf32>
    %4 = vector.broadcast %3 : vector<1x128xf32> to vector<128x128xf32>
    %5 = arith.addf %2, %4 : vector<128x128xf32>
    %c0_5 = arith.constant 0 : index
    %c0_6 = arith.constant 0 : index
    %6 = vector.load %arg5[%c0_5, %c0_6] : memref<128x128xf32, #tpu.memory_space<vmem>>, vector<128x128xf32>
    tpu.vector_store %arg5[%c0_5, %c0_6], %5 {strides = array<i32>} : memref<128x128xf32, #tpu.memory_space<vmem>>, vector<128x128xf32>,
    return
  }
  func.func @transform_0(%arg0: i32, %arg1: i32) -> (i32, i32) {
    %c0_i32 = arith.constant 0 : i32
    %c0_i32_0 = arith.constant 0 : i32
    return %arg0, %c0_i32 : i32, i32
  }
  func.func @transform_1(%arg0: i32, %arg1: i32) -> (i32, i32) {
    %c0_i32 = arith.constant 0 : i32
    %c0_i32_0 = arith.constant 0 : i32
    return %c0_i32, %arg1 : i32, i32
  }
  func.func @transform_2(%arg0: i32, %arg1: i32) -> (i32, i32) {
    %c0_i32 = arith.constant 0 : i32
    %c0_i32_0 = arith.constant 0 : i32
    return %c0_i32, %arg1 : i32, i32
  }
  func.func @transform_3(%arg0: i32, %arg1: i32) -> (i32, i32) {
    %c0_i32 = arith.constant 0 : i32
    return %arg0, %arg1 : i32, i32
  }
}

</mosaic_0001>

<bundles_post_ra>
// kernel: seq2seq_forward.5
= control target key start
LH: loop header
LB: loop body
LE: loop exit
PB: predicated region body
PF: predicated region fallthrough
CT: control target
= control target key end

     0   :  { %s602_s1 = inlined_call_operand.vmem [shape: bf16[128,128], index: 1, kind: input, shape index: {}]   ;;  %s603_s0 = inlined_call_operand.vmem [shape: bf16[128,128], index: 0, kind: input, shape index: {}]   ;;  %s604_s2 = inlined_call_operand.vmem [shape: f32[1,128], index: 2, kind: input, shape index: {}]   ;;  %s605_s3 = inlined_call_operand.vmem [shape: bf16[128,128], index: 3, kind: output, shape index: {}]  }
   0x1   :  { %v491_v0 = vld [vmem:[%s602_s1 + $0x38] sm:$0xff]   ;;  %v492_v1 = vld [vmem:[%s602_s1 + $0x30] sm:$0xff]   ;;  %v493_v2 = vld [vmem:[%s602_s1 + $0x28] sm:$0xff]  }
   0x2   :  { %443 = vmatprep.subr.bf16.mxu0 %v491_v0  ;;  %475 = vmatprep.subr.bf16.mxu1 %v491_v0  ;;  %v494_v3 = vld [vmem:[%s602_s1 + $0x20] sm:$0xff]   ;;  %v495_v6 = vld [vmem:[%s602_s1 + $0x18] sm:$0xff]   ;;  %v496_v7 = vld [vmem:[%s602_s1 + $0x10] sm:$0xff]  }
   0x3   :  { %444 = vmatpush3.bf16.msra.mxu0 %v491_v0  ;;  %483 = vmatpush3.bf16.msra.mxu1 %v491_v0  ;;  %v499_v4 = vld [vmem:[%s603_s0] sm:$0xff]   ;;  %v497_v8 = vld [vmem:[%s602_s1 + $0x8] sm:$0xff]   ;;  %v503_v12 = vld [vmem:[%s603_s0 + $0x10] sm:$0xff]  }
   0x4   :  { %445 = vmatprep.subr.bf16.mxu0 %v492_v1  ;;  %476 = vmatprep.subr.bf16.mxu1 %v492_v1  ;;  %v500_v5 = vld [vmem:[%s603_s0 + $0x20] sm:$0xff]   ;;  %v501_v10 = vld [vmem:[%s603_s0 + $0x8] sm:$0xff]   ;;  %v504_v13 = vld [vmem:[%s603_s0 + $0x30] sm:$0xff]  }
   0x5   :  { %459 = vmatprep.mubr.bf16.mxu0 %v499_v4  ;;  %467 = vmatprep.mubr.bf16.mxu1 %v500_v5  ;;  %v498_v9 = vld [vmem:[%s602_s1] sm:$0xff]   ;;  %v502_v11 = vld [vmem:[%s603_s0 + $0x28] sm:$0xff]   ;;  %v505_v14 = vld [vmem:[%s603_s0 + $0x18] sm:$0xff]  }
   0x6   :  { %v506_v15 = vld [vmem:[%s603_s0 + $0x38] sm:$0xff]   ;;  %v331_v18 = vld [vmem:[%s604_s2] ss:$0 sm:$0xff] }
   0x7   :  { %446 = vmatpush3.bf16.msra.mxu0 %v492_v1  ;;  %484 = vmatpush3.bf16.msra.mxu1 %v492_v1 }
   0x8   :  { %447 = vmatprep.subr.bf16.mxu0 %v493_v2  ;;  %477 = vmatprep.subr.bf16.mxu1 %v493_v2 }
   0xb   :  { %448 = vmatpush3.bf16.msra.mxu0 %v493_v2  ;;  %485 = vmatpush3.bf16.msra.mxu1 %v493_v2 }
   0xc   :  { %449 = vmatprep.subr.bf16.mxu0 %v494_v3  ;;  %478 = vmatprep.subr.bf16.mxu1 %v494_v3 }
   0xf   :  { %450 = vmatpush3.bf16.msra.mxu0 %v494_v3  ;;  %486 = vmatpush3.bf16.msra.mxu1 %v494_v3 }
  0x10   :  { %451 = vmatprep.subr.bf16.mxu0 %v495_v6  ;;  %479 = vmatprep.subr.bf16.mxu1 %v495_v6 }
  0x13   :  { %452 = vmatpush3.bf16.msra.mxu0 %v495_v6  ;;  %487 = vmatpush3.bf16.msra.mxu1 %v495_v6 }
  0x14   :  { %453 = vmatprep.subr.bf16.mxu0 %v496_v7  ;;  %480 = vmatprep.subr.bf16.mxu1 %v496_v7 }
  0x17   :  { %454 = vmatpush3.bf16.msra.mxu0 %v496_v7  ;;  %488 = vmatpush3.bf16.msra.mxu1 %v496_v7 }
  0x18   :  { %455 = vmatprep.subr.bf16.mxu0 %v497_v8  ;;  %481 = vmatprep.subr.bf16.mxu1 %v497_v8 }
  0x1b   :  { %456 = vmatpush3.bf16.msra.mxu0 %v497_v8  ;;  %489 = vmatpush3.bf16.msra.mxu1 %v497_v8 }
  0x1c   :  { %457 = vmatprep.subr.bf16.mxu0 %v498_v9  ;;  %482 = vmatprep.subr.bf16.mxu1 %v498_v9 }
  0x1f   :  { %458 = vmatpush3.bf16.msra.mxu0 %v498_v9  ;;  %490 = vmatpush3.bf16.msra.mxu1 %v498_v9 }
  0x22   :  { %460 = vmatmul.mubr.bf16.vlgmr.msra.gmra.mxu0 %v501_v10  ;;  %468 = vmatmul.mubr.bf16.vlgmr.msra.gmra.mxu1 %v502_v11 }
  0x23   :  { %463 = vmatprep.mubr.bf16.mxu0 %v503_v12  ;;  %471 = vmatprep.mubr.bf16.mxu1 %v504_v13 }
  0x2a   :  { %464 = vmatmul.mubr.bf16.gmra.mxu0 %v505_v14  ;;  %472 = vmatmul.mubr.bf16.gmra.mxu1 %v506_v15 }
  0xe2   :  { %v461_v16 = vpop.f32.mrf.mxu0  ;;  %v469_v17 = vpop.f32.mrf.mxu1 }
  0xe3   :  { %v193_v23 = vadd.f32 %v461_v16, %v331_v18  ;;  %v225_v24 = vadd.f32 %v469_v17, %v331_v18 }
  0xe4   :  { %v184_v19 = vpop.f32.mrf.mxu0  ;;  %v216_v20 = vpop.f32.mrf.mxu1 }
  0xe5   :  { %v185_v27 = vadd.f32 %v331_v18, %v184_v19  ;;  %v217_v28 = vadd.f32 %v331_v18, %v216_v20 }
  0xe6   :  { %v462_v21 = vpop.f32.mrf.mxu0  ;;  %v470_v22 = vpop.f32.mrf.mxu1 }
  0xe7   :  { %v196_v25 = vadd.f32 %v462_v21, %v331_v18  ;;  %v228_v26 = vadd.f32 %v470_v22, %v331_v18 }
  0xe8   :  { %v187_v29 = vpop.f32.mrf.mxu0  ;;  %v219_v30 = vpop.f32.mrf.mxu1 }
  0xe9   :  { %v388_v31 = vpack.c.bf16 %v196_v25, %v193_v23  ;;  %v408_v32 = vpack.c.bf16 %v228_v26, %v225_v24  ;;  %v188_v33 = vadd.f32 %v331_v18, %v187_v29  ;;  %v220_v34 = vadd.f32 %v331_v18, %v219_v30 }
  0xea   :  { %v465_v35 = vpop.f32.mrf.mxu0  ;;  %v473_v36 = vpop.f32.mrf.mxu1 }
  0xeb   :  { %420 = vst [vmem:[%s605_s3 + $0x8] sm:$0xff] %v388_v31   ;;  %424 = vst [vmem:[%s605_s3 + $0x28] sm:$0xff] %v408_v32   ;;  %v383_v37 = vpack.c.bf16 %v188_v33, %v185_v27  ;;  %v403_v38 = vpack.c.bf16 %v220_v34, %v217_v28  ;;  %v209_v43 = vadd.f32 %v465_v35, %v331_v18 }
  0xec   :  { %v200_v39 = vpop.f32.mrf.mxu0  ;;  %v232_v40 = vpop.f32.mrf.mxu1  ;;  %v241_v44 = vadd.f32 %v473_v36, %v331_v18 }
  0xed   :  { %384 = vst [vmem:[%s605_s3] sm:$0xff] %v383_v37   ;;  %423 = vst [vmem:[%s605_s3 + $0x20] sm:$0xff] %v403_v38   ;;  %v201_v47 = vadd.f32 %v331_v18, %v200_v39  ;;  %v233_v48 = vadd.f32 %v331_v18, %v232_v40 }
  0xee   :  { %v466_v41 = vpop.f32.mrf.mxu0  ;;  %v474_v42 = vpop.f32.mrf.mxu1 }
  0xef   :  { %v212_v45 = vadd.f32 %v466_v41, %v331_v18  ;;  %v244_v46 = vadd.f32 %v474_v42, %v331_v18 }
  0xf0   :  { %v203_v49 = vpop.f32.mrf.mxu0  ;;  %v235_v50 = vpop.f32.mrf.mxu1 }
  0xf1   :  { %v398_v51 = vpack.c.bf16 %v212_v45, %v209_v43  ;;  %v418_v52 = vpack.c.bf16 %v244_v46, %v241_v44  ;;  %v204_v53 = vadd.f32 %v331_v18, %v203_v49  ;;  %v236_v54 = vadd.f32 %v331_v18, %v235_v50 }
  0xf3   :  { %422 = vst [vmem:[%s605_s3 + $0x18] sm:$0xff] %v398_v51   ;;  %426 = vst [vmem:[%s605_s3 + $0x38] sm:$0xff] %v418_v52   ;;  %v393_v55 = vpack.c.bf16 %v204_v53, %v201_v47  ;;  %v413_v56 = vpack.c.bf16 %v236_v54, %v233_v48 }
  0xf5   :  { %421 = vst [vmem:[%s605_s3 + $0x10] sm:$0xff] %v393_v55   ;;  %425 = vst [vmem:[%s605_s3 + $0x30] sm:$0xff] %v413_v56  }

// kernel: seq2seq_forward.7
= control target key start
LH: loop header
LB: loop body
LE: loop exit
PB: predicated region body
PF: predicated region fallthrough
CT: control target
= control target key end

     0   :  { %v842_v0 = vmov 0.0   ;;  %vm843_vm0 = vmmov 0   ;;  %s1084_s2 = inlined_call_operand.vmem [shape: bf16[128,128], index: 2, kind: input, shape index: {}]   ;;  %s1085_s1 = inlined_call_operand.vmem [shape: f32[16,128], index: 1, kind: input, shape index: {}]   ;;  %s1086_s0 = inlined_call_operand.vmem [shape: bf16[8,16,128], index: 0, kind: input, shape index: {}]   ;;  %s1087_s3 = inlined_call_operand.vmem [shape: f32[16,128], index: 3, kind: output, shape index: {}]  }
   0x1   :  { %640 = vmatprep.subr.bf16.mxu0 %v842_v0  ;;  %v868_v1 = vld [vmem:[%s1084_s2 + $0x38] sm:$0xff]   ;;  %656 = vmatprep.mubr.msk.bf16.mxu0 %vm843_vm0, %v842_v0  ;;  %v879_v2 = vld [vmem:[%s1084_s2 + $0x30] sm:$0xff]   ;;  %v888_v3 = vld [vmem:[%s1084_s2 + $0x28] sm:$0xff]  }
   0x2   :  { %660 = vmatprep.subr.bf16.mxu1 %v842_v0  ;;  %676 = vmatprep.mubr.msk.bf16.mxu1 %vm843_vm0, %v842_v0  ;;  %v897_v4 = vld [vmem:[%s1084_s2 + $0x20] sm:$0xff]   ;;  %v906_v5 = vld [vmem:[%s1084_s2 + $0x18] sm:$0xff]   ;;  %v915_v6 = vld [vmem:[%s1084_s2 + $0x10] sm:$0xff]  }
   0x3   :  { %641 = vmatpush3.bf16.msra.mxu0 %v868_v1  ;;  %661 = vmatpush3.bf16.msra.mxu1 %v868_v1  ;;  %v924_v7 = vld [vmem:[%s1084_s2 + $0x8] sm:$0xff]   ;;  %v933_v8 = vld [vmem:[%s1084_s2] sm:$0xff]   ;;  %v562_v36 = vld [vmem:[%s1086_s0 + $0x10] sm:$0xff]  }
   0x4   :  { %642 = vmatprep.subr.bf16.mxu0 %v842_v0  ;;  %662 = vmatprep.subr.bf16.mxu1 %v842_v0  ;;  %v19_v9 = vld [vmem:[%s1085_s1] sm:$0xff]  ;;  %v20_v10 = vld [vmem:[%s1085_s1 + $0x8] sm:$0xff]  ;;  %v539_v37 = vunpack.c.l.bf16 %v562_v36  ;;  %v540_v39 = vunpack.c.h.bf16 %v562_v36  ;;  %v563_v48 = vld [vmem:[%s1086_s0 + $0x18] sm:$0xff]  }
   0x5   :  { %v45_v11 = vpack.c.bf16 %v20_v10, %v19_v9  ;;  %v530_v12 = vld [vmem:[%s1086_s0] sm:$0xff]   ;;  %v561_v24 = vld [vmem:[%s1086_s0 + $0x8] sm:$0xff]   ;;  %v543_v49 = vunpack.c.l.bf16 %v563_v48  ;;  %v544_v51 = vunpack.c.h.bf16 %v563_v48 }
   0x6   :  { %v531_v13 = vunpack.c.l.bf16 %v530_v12  ;;  %v532_v15 = vunpack.c.h.bf16 %v530_v12  ;;  %v535_v25 = vunpack.c.l.bf16 %v561_v24  ;;  %v536_v27 = vunpack.c.h.bf16 %v561_v24  ;;  %v564_v60 = vld [vmem:[%s1086_s0 + $0x20] sm:$0xff]  }
   0x7   :  { %643 = vmatpush3.bf16.msra.mxu0 %v879_v2  ;;  %663 = vmatpush3.bf16.msra.mxu1 %v879_v2  ;;  %v547_v61 = vunpack.c.l.bf16 %v564_v60  ;;  %v548_v63 = vunpack.c.h.bf16 %v564_v60 }
   0x8   :  { %644 = vmatprep.subr.bf16.mxu0 %v842_v0  ;;  %664 = vmatprep.subr.bf16.mxu1 %v842_v0 }
   0xb   :  { %645 = vmatpush3.bf16.msra.mxu0 %v888_v3  ;;  %665 = vmatpush3.bf16.msra.mxu1 %v888_v3 }
   0xc   :  { %646 = vmatprep.subr.bf16.mxu0 %v842_v0  ;;  %666 = vmatprep.subr.bf16.mxu1 %v842_v0 }
   0xf   :  { %647 = vmatpush3.bf16.msra.mxu0 %v897_v4  ;;  %667 = vmatpush3.bf16.msra.mxu1 %v897_v4 }
  0x10   :  { %648 = vmatprep.subr.bf16.mxu0 %v842_v0  ;;  %668 = vmatprep.subr.bf16.mxu1 %v842_v0 }
  0x13   :  { %649 = vmatpush3.bf16.msra.mxu0 %v906_v5  ;;  %669 = vmatpush3.bf16.msra.mxu1 %v906_v5 }
  0x14   :  { %650 = vmatprep.subr.bf16.mxu0 %v842_v0  ;;  %670 = vmatprep.subr.bf16.mxu1 %v842_v0 }
  0x17   :  { %651 = vmatpush3.bf16.msra.mxu0 %v915_v6  ;;  %671 = vmatpush3.bf16.msra.mxu1 %v915_v6 }
  0x18   :  { %652 = vmatprep.subr.bf16.mxu0 %v842_v0  ;;  %672 = vmatprep.subr.bf16.mxu1 %v842_v0 }
  0x1b   :  { %653 = vmatpush3.bf16.msra.mxu0 %v924_v7  ;;  %673 = vmatpush3.bf16.msra.mxu1 %v924_v7 }
  0x1c   :  { %654 = vmatprep.subr.bf16.mxu0 %v842_v0  ;;  %674 = vmatprep.subr.bf16.mxu1 %v842_v0 }
  0x1f   :  { %655 = vmatpush3.bf16.msra.mxu0 %v933_v8  ;;  %675 = vmatpush3.bf16.msra.mxu1 %v933_v8 }
  0x20   :  { %680 = vmatprep.subr.bf16.mxu0 %v842_v0  ;;  %700 = vmatprep.subr.bf16.mxu1 %v842_v0 }
  0x22   :  { %657 = vmatmul.mubr.bf16.vlgmr.msra.gmra.mxu0 %v45_v11 }
  0x23   :  { %681 = vmatpush3.bf16.msra.mxu0 %v868_v1  ;;  %696 = vmatprep.mubr.msk.bf16.mxu0 %vm843_vm0, %v842_v0 }
  0x24   :  { %682 = vmatprep.subr.bf16.mxu0 %v842_v0 }
  0x27   :  { %683 = vmatpush3.bf16.msra.mxu0 %v879_v2 }
  0x28   :  { %684 = vmatprep.subr.bf16.mxu0 %v842_v0 }
  0x2b   :  { %685 = vmatpush3.bf16.msra.mxu0 %v888_v3 }
  0x2c   :  { %686 = vmatprep.subr.bf16.mxu0 %v842_v0 }
  0x2f   :  { %687 = vmatpush3.bf16.msra.mxu0 %v897_v4 }
  0x30   :  { %688 = vmatprep.subr.bf16.mxu0 %v842_v0 }
  0x33   :  { %689 = vmatpush3.bf16.msra.mxu0 %v906_v5 }
  0x34   :  { %690 = vmatprep.subr.bf16.mxu0 %v842_v0 }
  0x37   :  { %691 = vmatpush3.bf16.msra.mxu0 %v915_v6 }
  0x38   :  { %692 = vmatprep.subr.bf16.mxu0 %v842_v0 }
  0x3b   :  { %693 = vmatpush3.bf16.msra.mxu0 %v924_v7 }
  0x3c   :  { %694 = vmatprep.subr.bf16.mxu0 %v842_v0 }
  0x3f   :  { %695 = vmatpush3.bf16.msra.mxu0 %v933_v8 }
  0x40   :  { %720 = vmatprep.subr.bf16.mxu0 %v842_v0 }
  0xe2   :  { %v128_v14 = vpop.f32.mrf.mxu0 }
  0xe3   :  { %v135_v16 = vadd.f32 %v531_v13, %v128_v14 }
  0xe4   :  { %v658_v17 = vpop.f32.mrf.mxu0 }
  0xe5   :  { %810 = vtanh.f32 %v135_v16 }
  0xe6   :  { %v131_v18 = vpop.f32.mrf.mxu0 }
  0xe7   :  { %v136_v19 = vadd.f32 %v532_v15, %v131_v18 }
  0xe8   :  { %v659_v20 = vpop.f32.mrf.mxu0 }
  0xe9   :  { %812 = vtanh.f32 %v136_v19 }
  0xf2   :  { %v811_v21 = vpop.eup %810 }
  0xf6   :  { %v813_v22 = vpop.eup %812 }
  0xf7   :  { %v144_v23 = vpack.c.bf16 %v813_v22, %v811_v21 }
  0xf9   :  { %677 = vmatmul.mubr.bf16.vlgmr.msra.gmra.mxu1 %v144_v23 }
  0xfa   :  { %701 = vmatpush3.bf16.msra.mxu1 %v868_v1  ;;  %716 = vmatprep.mubr.msk.bf16.mxu1 %vm843_vm0, %v842_v0 }
  0xfb   :  { %702 = vmatprep.subr.bf16.mxu1 %v842_v0 }
  0xfe   :  { %703 = vmatpush3.bf16.msra.mxu1 %v879_v2 }
  0xff   :  { %704 = vmatprep.subr.bf16.mxu1 %v842_v0 }
 0x102   :  { %705 = vmatpush3.bf16.msra.mxu1 %v888_v3 }
 0x103   :  { %706 = vmatprep.subr.bf16.mxu1 %v842_v0 }
 0x106   :  { %707 = vmatpush3.bf16.msra.mxu1 %v897_v4 }
 0x107   :  { %708 = vmatprep.subr.bf16.mxu1 %v842_v0 }
 0x10a   :  { %709 = vmatpush3.bf16.msra.mxu1 %v906_v5 }
 0x10b   :  { %710 = vmatprep.subr.bf16.mxu1 %v842_v0 }
 0x10e   :  { %711 = vmatpush3.bf16.msra.mxu1 %v915_v6 }
 0x10f   :  { %712 = vmatprep.subr.bf16.mxu1 %v842_v0 }
 0x112   :  { %713 = vmatpush3.bf16.msra.mxu1 %v924_v7 }
 0x113   :  { %714 = vmatprep.subr.bf16.mxu1 %v842_v0 }
 0x116   :  { %715 = vmatpush3.bf16.msra.mxu1 %v933_v8 }
 0x117   :  { %740 = vmatprep.subr.bf16.mxu1 %v842_v0 }
 0x1b9   :  { %v179_v26 = vpop.f32.mrf.mxu1 }
 0x1ba   :  { %v186_v28 = vadd.f32 %v535_v25, %v179_v26 }
 0x1bb   :  { %v678_v29 = vpop.f32.mrf.mxu1 }
 0x1bc   :  { %814 = vtanh.f32 %v186_v28 }
 0x1bd   :  { %v182_v30 = vpop.f32.mrf.mxu1 }
 0x1be   :  { %v187_v31 = vadd.f32 %v536_v27, %v182_v30 }
 0x1bf   :  { %v679_v32 = vpop.f32.mrf.mxu1 }
 0x1c0   :  { %816 = vtanh.f32 %v187_v31  ;;  %v567_v32 = vld [vmem:[%s1086_s0 + $0x38] sm:$0xff]  }
 0x1c1   :  { %v560_v36 = vunpack.c.h.bf16 %v567_v32 }
 0x1c9   :  { %v815_v33 = vpop.eup %814 }
 0x1cd   :  { %v817_v34 = vpop.eup %816 }
 0x1ce   :  { %v195_v35 = vpack.c.bf16 %v817_v34, %v815_v33  ;;  %v559_v33 = vunpack.c.l.bf16 %v567_v32 }
 0x1d0   :  { %697 = vmatmul.mubr.bf16.vlgmr.msra.gmra.mxu0 %v195_v35 }
 0x1d1   :  { %721 = vmatpush3.bf16.msra.mxu0 %v868_v1  ;;  %736 = vmatprep.mubr.msk.bf16.mxu0 %vm843_vm0, %v842_v0 }
 0x1d2   :  { %722 = vmatprep.subr.bf16.mxu0 %v842_v0 }
 0x1d5   :  { %723 = vmatpush3.bf16.msra.mxu0 %v879_v2 }
 0x1d6   :  { %724 = vmatprep.subr.bf16.mxu0 %v842_v0 }
 0x1d9   :  { %725 = vmatpush3.bf16.msra.mxu0 %v888_v3 }
 0x1da   :  { %726 = vmatprep.subr.bf16.mxu0 %v842_v0 }
 0x1dd   :  { %727 = vmatpush3.bf16.msra.mxu0 %v897_v4 }
 0x1de   :  { %728 = vmatprep.subr.bf16.mxu0 %v842_v0 }
 0x1e1   :  { %729 = vmatpush3.bf16.msra.mxu0 %v906_v5 }
 0x1e2   :  { %730 = vmatprep.subr.bf16.mxu0 %v842_v0 }
 0x1e5   :  { %731 = vmatpush3.bf16.msra.mxu0 %v915_v6 }
 0x1e6   :  { %732 = vmatprep.subr.bf16.mxu0 %v842_v0 }
 0x1e9   :  { %733 = vmatpush3.bf16.msra.mxu0 %v924_v7 }
 0x1ea   :  { %734 = vmatprep.subr.bf16.mxu0 %v842_v0 }
 0x1ed   :  { %735 = vmatpush3.bf16.msra.mxu0 %v933_v8 }
 0x1ee   :  { %760 = vmatprep.subr.bf16.mxu0 %v842_v0 }
 0x290   :  { %v230_v38 = vpop.f32.mrf.mxu0 }
 0x291   :  { %v237_v40 = vadd.f32 %v539_v37, %v230_v38 }
 0x292   :  { %v698_v41 = vpop.f32.mrf.mxu0 }
 0x293   :  { %818 = vtanh.f32 %v237_v40 }
 0x294   :  { %v233_v42 = vpop.f32.mrf.mxu0 }
 0x295   :  { %v238_v43 = vadd.f32 %v540_v39, %v233_v42 }
 0x296   :  { %v699_v44 = vpop.f32.mrf.mxu0 }
 0x297   :  { %820 = vtanh.f32 %v238_v43 }
 0x2a0   :  { %v819_v45 = vpop.eup %818 }
 0x2a4   :  { %v821_v46 = vpop.eup %820 }
 0x2a5   :  { %v246_v47 = vpack.c.bf16 %v821_v46, %v819_v45 }
 0x2a7   :  { %717 = vmatmul.mubr.bf16.vlgmr.msra.gmra.mxu1 %v246_v47 }
 0x2a8   :  { %741 = vmatpush3.bf16.msra.mxu1 %v868_v1  ;;  %756 = vmatprep.mubr.msk.bf16.mxu1 %vm843_vm0, %v842_v0 }
 0x2a9   :  { %742 = vmatprep.subr.bf16.mxu1 %v842_v0 }
 0x2ac   :  { %743 = vmatpush3.bf16.msra.mxu1 %v879_v2 }
 0x2ad   :  { %744 = vmatprep.subr.bf16.mxu1 %v842_v0 }
 0x2b0   :  { %745 = vmatpush3.bf16.msra.mxu1 %v888_v3 }
 0x2b1   :  { %746 = vmatprep.subr.bf16.mxu1 %v842_v0 }
 0x2b4   :  { %747 = vmatpush3.bf16.msra.mxu1 %v897_v4 }
 0x2b5   :  { %748 = vmatprep.subr.bf16.mxu1 %v842_v0 }
 0x2b8   :  { %749 = vmatpush3.bf16.msra.mxu1 %v906_v5 }
 0x2b9   :  { %750 = vmatprep.subr.bf16.mxu1 %v842_v0 }
 0x2bc   :  { %751 = vmatpush3.bf16.msra.mxu1 %v915_v6 }
 0x2bd   :  { %752 = vmatprep.subr.bf16.mxu1 %v842_v0 }
 0x2c0   :  { %753 = vmatpush3.bf16.msra.mxu1 %v924_v7 }
 0x2c1   :  { %754 = vmatprep.subr.bf16.mxu1 %v842_v0 }
 0x2c4   :  { %755 = vmatpush3.bf16.msra.mxu1 %v933_v8 }
 0x2c5   :  { %780 = vmatprep.subr.bf16.mxu1 %v842_v0 }
 0x367   :  { %v281_v50 = vpop.f32.mrf.mxu1 }
 0x368   :  { %v288_v52 = vadd.f32 %v543_v49, %v281_v50 }
 0x369   :  { %v718_v53 = vpop.f32.mrf.mxu1 }
 0x36a   :  { %822 = vtanh.f32 %v288_v52 }
 0x36b   :  { %v284_v54 = vpop.f32.mrf.mxu1 }
 0x36c   :  { %v289_v55 = vadd.f32 %v544_v51, %v284_v54 }
 0x36d   :  { %v719_v56 = vpop.f32.mrf.mxu1 }
 0x36e   :  { %824 = vtanh.f32 %v289_v55 }
 0x377   :  { %v823_v57 = vpop.eup %822 }
 0x37b   :  { %v825_v58 = vpop.eup %824 }
 0x37c   :  { %v297_v59 = vpack.c.bf16 %v825_v58, %v823_v57 }
 0x37e   :  { %737 = vmatmul.mubr.bf16.vlgmr.msra.gmra.mxu0 %v297_v59 }
 0x37f   :  { %761 = vmatpush3.bf16.msra.mxu0 %v868_v1  ;;  %776 = vmatprep.mubr.msk.bf16.mxu0 %vm843_vm0, %v842_v0 }
 0x380   :  { %762 = vmatprep.subr.bf16.mxu0 %v842_v0 }
 0x383   :  { %763 = vmatpush3.bf16.msra.mxu0 %v879_v2 }
 0x384   :  { %764 = vmatprep.subr.bf16.mxu0 %v842_v0 }
 0x387   :  { %765 = vmatpush3.bf16.msra.mxu0 %v888_v3 }
 0x388   :  { %766 = vmatprep.subr.bf16.mxu0 %v842_v0 }
 0x38b   :  { %767 = vmatpush3.bf16.msra.mxu0 %v897_v4 }
 0x38c   :  { %768 = vmatprep.subr.bf16.mxu0 %v842_v0 }
 0x38f   :  { %769 = vmatpush3.bf16.msra.mxu0 %v906_v5 }
 0x390   :  { %770 = vmatprep.subr.bf16.mxu0 %v842_v0 }
 0x393   :  { %771 = vmatpush3.bf16.msra.mxu0 %v915_v6 }
 0x394   :  { %772 = vmatprep.subr.bf16.mxu0 %v842_v0 }
 0x397   :  { %773 = vmatpush3.bf16.msra.mxu0 %v924_v7 }
 0x398   :  { %774 = vmatprep.subr.bf16.mxu0 %v842_v0 }
 0x39b   :  { %775 = vmatpush3.bf16.msra.mxu0 %v933_v8 }
 0x43e   :  { %v332_v62 = vpop.f32.mrf.mxu0 }
 0x43f   :  { %v339_v9 = vadd.f32 %v547_v61, %v332_v62 }
 0x440   :  { %v738_v10 = vpop.f32.mrf.mxu0 }
 0x441   :  { %826 = vtanh.f32 %v339_v9 }
 0x442   :  { %v335_v11 = vpop.f32.mrf.mxu0 }
 0x443   :  { %v340_v12 = vadd.f32 %v548_v63, %v335_v11 }
 0x444   :  { %v739_v13 = vpop.f32.mrf.mxu0 }
 0x445   :  { %828 = vtanh.f32 %v340_v12 }
 0x44e   :  { %v827_v14 = vpop.eup %826 }
 0x452   :  { %v829_v15 = vpop.eup %828 }
 0x453   :  { %v348_v16 = vpack.c.bf16 %v829_v15, %v827_v14 }
 0x455   :  { %757 = vmatmul.mubr.bf16.vlgmr.msra.gmra.mxu1 %v348_v16 }
 0x456   :  { %781 = vmatpush3.bf16.msra.mxu1 %v868_v1  ;;  %796 = vmatprep.mubr.msk.bf16.mxu1 %vm843_vm0, %v842_v0  ;;  %v565_v1 = vld [vmem:[%s1086_s0 + $0x28] sm:$0xff]  }
 0x457   :  { %782 = vmatprep.subr.bf16.mxu1 %v842_v0 }
 0x45a   :  { %783 = vmatpush3.bf16.msra.mxu1 %v879_v2  ;;  %v551_v2 = vunpack.c.l.bf16 %v565_v1 }
 0x45b   :  { %784 = vmatprep.subr.bf16.mxu1 %v842_v0 }
 0x45e   :  { %785 = vmatpush3.bf16.msra.mxu1 %v888_v3 }
 0x45f   :  { %786 = vmatprep.subr.bf16.mxu1 %v842_v0 }
 0x462   :  { %787 = vmatpush3.bf16.msra.mxu1 %v897_v4  ;;  %v552_v4 = vunpack.c.h.bf16 %v565_v1 }
 0x463   :  { %788 = vmatprep.subr.bf16.mxu1 %v842_v0 }
 0x466   :  { %789 = vmatpush3.bf16.msra.mxu1 %v906_v5 }
 0x467   :  { %790 = vmatprep.subr.bf16.mxu1 %v842_v0 }
 0x46a   :  { %791 = vmatpush3.bf16.msra.mxu1 %v915_v6 }
 0x46b   :  { %792 = vmatprep.subr.bf16.mxu1 %v842_v0 }
 0x46e   :  { %793 = vmatpush3.bf16.msra.mxu1 %v924_v7 }
 0x46f   :  { %794 = vmatprep.subr.bf16.mxu1 %v842_v0  ;;  %v566_v0 = vld [vmem:[%s1086_s0 + $0x30] sm:$0xff]  }
 0x470   :  { %v556_v23 = vunpack.c.h.bf16 %v566_v0 }
 0x472   :  { %795 = vmatpush3.bf16.msra.mxu1 %v933_v8  ;;  %v555_v8 = vunpack.c.l.bf16 %v566_v0 }
 0x515   :  { %v383_v3 = vpop.f32.mrf.mxu1 }
 0x516   :  { %v390_v5 = vadd.f32 %v551_v2, %v383_v3 }
 0x517   :  { %v758_v17 = vpop.f32.mrf.mxu1 }
 0x518   :  { %830 = vtanh.f32 %v390_v5 }
 0x519   :  { %v386_v18 = vpop.f32.mrf.mxu1 }
 0x51a   :  { %v391_v19 = vadd.f32 %v552_v4, %v386_v18 }
 0x51b   :  { %v759_v6 = vpop.f32.mrf.mxu1 }
 0x51c   :  { %832 = vtanh.f32 %v391_v19 }
 0x525   :  { %v831_v20 = vpop.eup %830 }
 0x529   :  { %v833_v7 = vpop.eup %832 }
 0x52a   :  { %v399_v21 = vpack.c.bf16 %v833_v7, %v831_v20 }
 0x52c   :  { %777 = vmatmul.mubr.bf16.vlgmr.msra.gmra.mxu0 %v399_v21 }
 0x5ec   :  { %v434_v22 = vpop.f32.mrf.mxu0 }
 0x5ed   :  { %v441_v24 = vadd.f32 %v555_v8, %v434_v22 }
 0x5ee   :  { %v778_v25 = vpop.f32.mrf.mxu0 }
 0x5ef   :  { %834 = vtanh.f32 %v441_v24 }
 0x5f0   :  { %v437_v26 = vpop.f32.mrf.mxu0 }
 0x5f1   :  { %v442_v27 = vadd.f32 %v556_v23, %v437_v26 }
 0x5f2   :  { %v779_v28 = vpop.f32.mrf.mxu0 }
 0x5f3   :  { %836 = vtanh.f32 %v442_v27 }
 0x5fc   :  { %v835_v29 = vpop.eup %834 }
 0x600   :  { %v837_v30 = vpop.eup %836 }
 0x601   :  { %v450_v31 = vpack.c.bf16 %v837_v30, %v835_v29 }
 0x603   :  { %797 = vmatmul.mubr.bf16.vlgmr.msra.gmra.mxu1 %v450_v31 }
 0x6c3   :  { %v485_v34 = vpop.f32.mrf.mxu1 }
 0x6c4   :  { %v492_v35 = vadd.f32 %v559_v33, %v485_v34 }
 0x6c5   :  { %v798_v37 = vpop.f32.mrf.mxu1 }
 0x6c6   :  { %838 = vtanh.f32 %v492_v35 }
 0x6c7   :  { %v488_v38 = vpop.f32.mrf.mxu1 }
 0x6c8   :  { %v493_v39 = vadd.f32 %v560_v36, %v488_v38 }
 0x6c9   :  { %v799_v40 = vpop.f32.mrf.mxu1 }
 0x6ca   :  { %840 = vtanh.f32 %v493_v39 }
 0x6d3   :  { %v839_v41 = vpop.eup %838 }
 0x6d4   :  { %501 = vst [vmem:[%s1087_s3] sm:$0xff] %v839_v41 }
 0x6d7   :  { %v841_v42 = vpop.eup %840 }
 0x6d8   :  { %502 = vst [vmem:[%s1087_s3 + $0x8] sm:$0xff] %v841_v42 }

// kernel: seq2seq_forward.8
= control target key start
LH: loop header
LB: loop body
LE: loop exit
PB: predicated region body
PF: predicated region fallthrough
CT: control target
= control target key end

     0   :  { %v1010_v0 = vmov 0.0   ;;  %vm1011_vm0 = vmmov 0   ;;  %s1270_s2 = inlined_call_operand.vmem [shape: bf16[128,128], index: 2, kind: input, shape index: {}]   ;;  %s1271_s1 = inlined_call_operand.vmem [shape: f32[16,128], index: 1, kind: input, shape index: {}]   ;;  %s1272_s0 = inlined_call_operand.vmem [shape: bf16[8,16,128], index: 0, kind: input, shape index: {}]   ;;  %s1273_s3 = inlined_call_operand.vmem [shape: bf16[8,16,128], index: 3, kind: output, shape index: {}]  }
   0x1   :  { %808 = vmatprep.subr.bf16.mxu0 %v1010_v0  ;;  %v1036_v1 = vld [vmem:[%s1270_s2 + $0x38] sm:$0xff]   ;;  %824 = vmatprep.mubr.msk.bf16.mxu0 %vm1011_vm0, %v1010_v0  ;;  %v1047_v2 = vld [vmem:[%s1270_s2 + $0x30] sm:$0xff]   ;;  %v1056_v3 = vld [vmem:[%s1270_s2 + $0x28] sm:$0xff]  }
   0x2   :  { %828 = vmatprep.subr.bf16.mxu1 %v1010_v0  ;;  %844 = vmatprep.mubr.msk.bf16.mxu1 %vm1011_vm0, %v1010_v0  ;;  %v1065_v4 = vld [vmem:[%s1270_s2 + $0x20] sm:$0xff]   ;;  %v1074_v5 = vld [vmem:[%s1270_s2 + $0x18] sm:$0xff]   ;;  %v1083_v6 = vld [vmem:[%s1270_s2 + $0x10] sm:$0xff]  }
   0x3   :  { %809 = vmatpush3.bf16.msra.mxu0 %v1036_v1  ;;  %829 = vmatpush3.bf16.msra.mxu1 %v1036_v1  ;;  %v1092_v7 = vld [vmem:[%s1270_s2 + $0x8] sm:$0xff]   ;;  %v1101_v8 = vld [vmem:[%s1270_s2] sm:$0xff]   ;;  %v724_v36 = vld [vmem:[%s1272_s0 + $0x10] sm:$0xff]  }
   0x4   :  { %810 = vmatprep.subr.bf16.mxu0 %v1010_v0  ;;  %830 = vmatprep.subr.bf16.mxu1 %v1010_v0  ;;  %v19_v9 = vld [vmem:[%s1271_s1] sm:$0xff]  ;;  %v20_v10 = vld [vmem:[%s1271_s1 + $0x8] sm:$0xff]  ;;  %v670_v37 = vunpack.c.l.bf16 %v724_v36  ;;  %v671_v39 = vunpack.c.h.bf16 %v724_v36  ;;  %v726_v48 = vld [vmem:[%s1272_s0 + $0x18] sm:$0xff]  }
   0x5   :  { %v45_v11 = vpack.c.bf16 %v20_v10, %v19_v9  ;;  %v651_v12 = vld [vmem:[%s1272_s0] sm:$0xff]   ;;  %v722_v24 = vld [vmem:[%s1272_s0 + $0x8] sm:$0xff]   ;;  %v679_v49 = vunpack.c.l.bf16 %v726_v48  ;;  %v680_v51 = vunpack.c.h.bf16 %v726_v48 }
   0x6   :  { %v652_v13 = vunpack.c.l.bf16 %v651_v12  ;;  %v653_v15 = vunpack.c.h.bf16 %v651_v12  ;;  %v661_v25 = vunpack.c.l.bf16 %v722_v24  ;;  %v662_v27 = vunpack.c.h.bf16 %v722_v24  ;;  %v728_v60 = vld [vmem:[%s1272_s0 + $0x20] sm:$0xff]  }
   0x7   :  { %811 = vmatpush3.bf16.msra.mxu0 %v1047_v2  ;;  %831 = vmatpush3.bf16.msra.mxu1 %v1047_v2  ;;  %v688_v61 = vunpack.c.l.bf16 %v728_v60  ;;  %v689_v63 = vunpack.c.h.bf16 %v728_v60 }
   0x8   :  { %812 = vmatprep.subr.bf16.mxu0 %v1010_v0  ;;  %832 = vmatprep.subr.bf16.mxu1 %v1010_v0 }
   0xb   :  { %813 = vmatpush3.bf16.msra.mxu0 %v1056_v3  ;;  %833 = vmatpush3.bf16.msra.mxu1 %v1056_v3 }
   0xc   :  { %814 = vmatprep.subr.bf16.mxu0 %v1010_v0  ;;  %834 = vmatprep.subr.bf16.mxu1 %v1010_v0 }
   0xf   :  { %815 = vmatpush3.bf16.msra.mxu0 %v1065_v4  ;;  %835 = vmatpush3.bf16.msra.mxu1 %v1065_v4 }
  0x10   :  { %816 = vmatprep.subr.bf16.mxu0 %v1010_v0  ;;  %836 = vmatprep.subr.bf16.mxu1 %v1010_v0 }
  0x13   :  { %817 = vmatpush3.bf16.msra.mxu0 %v1074_v5  ;;  %837 = vmatpush3.bf16.msra.mxu1 %v1074_v5 }
  0x14   :  { %818 = vmatprep.subr.bf16.mxu0 %v1010_v0  ;;  %838 = vmatprep.subr.bf16.mxu1 %v1010_v0 }
  0x17   :  { %819 = vmatpush3.bf16.msra.mxu0 %v1083_v6  ;;  %839 = vmatpush3.bf16.msra.mxu1 %v1083_v6 }
  0x18   :  { %820 = vmatprep.subr.bf16.mxu0 %v1010_v0  ;;  %840 = vmatprep.subr.bf16.mxu1 %v1010_v0 }
  0x1b   :  { %821 = vmatpush3.bf16.msra.mxu0 %v1092_v7  ;;  %841 = vmatpush3.bf16.msra.mxu1 %v1092_v7 }
  0x1c   :  { %822 = vmatprep.subr.bf16.mxu0 %v1010_v0  ;;  %842 = vmatprep.subr.bf16.mxu1 %v1010_v0 }
  0x1f   :  { %823 = vmatpush3.bf16.msra.mxu0 %v1101_v8  ;;  %843 = vmatpush3.bf16.msra.mxu1 %v1101_v8 }
  0x20   :  { %848 = vmatprep.subr.bf16.mxu0 %v1010_v0  ;;  %868 = vmatprep.subr.bf16.mxu1 %v1010_v0 }
  0x22   :  { %825 = vmatmul.mubr.bf16.vlgmr.msra.gmra.mxu0 %v45_v11 }
  0x23   :  { %849 = vmatpush3.bf16.msra.mxu0 %v1036_v1  ;;  %864 = vmatprep.mubr.msk.bf16.mxu0 %vm1011_vm0, %v1010_v0 }
  0x24   :  { %850 = vmatprep.subr.bf16.mxu0 %v1010_v0 }
  0x27   :  { %851 = vmatpush3.bf16.msra.mxu0 %v1047_v2 }
  0x28   :  { %852 = vmatprep.subr.bf16.mxu0 %v1010_v0 }
  0x2b   :  { %853 = vmatpush3.bf16.msra.mxu0 %v1056_v3 }
  0x2c   :  { %854 = vmatprep.subr.bf16.mxu0 %v1010_v0 }
  0x2f   :  { %855 = vmatpush3.bf16.msra.mxu0 %v1065_v4 }
  0x30   :  { %856 = vmatprep.subr.bf16.mxu0 %v1010_v0 }
  0x33   :  { %857 = vmatpush3.bf16.msra.mxu0 %v1074_v5 }
  0x34   :  { %858 = vmatprep.subr.bf16.mxu0 %v1010_v0 }
  0x37   :  { %859 = vmatpush3.bf16.msra.mxu0 %v1083_v6 }
  0x38   :  { %860 = vmatprep.subr.bf16.mxu0 %v1010_v0 }
  0x3b   :  { %861 = vmatpush3.bf16.msra.mxu0 %v1092_v7 }
  0x3c   :  { %862 = vmatprep.subr.bf16.mxu0 %v1010_v0 }
  0x3f   :  { %863 = vmatpush3.bf16.msra.mxu0 %v1101_v8 }
  0x40   :  { %888 = vmatprep.subr.bf16.mxu0 %v1010_v0 }
  0xe2   :  { %v128_v14 = vpop.f32.mrf.mxu0 }
  0xe3   :  { %v135_v16 = vadd.f32 %v652_v13, %v128_v14 }
  0xe4   :  { %v826_v17 = vpop.f32.mrf.mxu0 }
  0xe5   :  { %978 = vtanh.f32 %v135_v16 }
  0xe6   :  { %v131_v18 = vpop.f32.mrf.mxu0 }
  0xe7   :  { %v136_v19 = vadd.f32 %v653_v15, %v131_v18 }
  0xe8   :  { %v827_v20 = vpop.f32.mrf.mxu0 }
  0xe9   :  { %980 = vtanh.f32 %v136_v19 }
  0xf2   :  { %v979_v21 = vpop.eup %978 }
  0xf6   :  { %v981_v22 = vpop.eup %980 }
  0xf7   :  { %v139_v23 = vpack.c.bf16 %v981_v22, %v979_v21 }
  0xf9   :  { %658 = vst [vmem:[%s1273_s3] sm:$0xff] %v139_v23   ;;  %845 = vmatmul.mubr.bf16.vlgmr.msra.gmra.mxu1 %v139_v23 }
  0xfa   :  { %869 = vmatpush3.bf16.msra.mxu1 %v1036_v1  ;;  %884 = vmatprep.mubr.msk.bf16.mxu1 %vm1011_vm0, %v1010_v0 }
  0xfb   :  { %870 = vmatprep.subr.bf16.mxu1 %v1010_v0 }
  0xfe   :  { %871 = vmatpush3.bf16.msra.mxu1 %v1047_v2 }
  0xff   :  { %872 = vmatprep.subr.bf16.mxu1 %v1010_v0 }
 0x102   :  { %873 = vmatpush3.bf16.msra.mxu1 %v1056_v3 }
 0x103   :  { %874 = vmatprep.subr.bf16.mxu1 %v1010_v0 }
 0x106   :  { %875 = vmatpush3.bf16.msra.mxu1 %v1065_v4 }
 0x107   :  { %876 = vmatprep.subr.bf16.mxu1 %v1010_v0 }
 0x10a   :  { %877 = vmatpush3.bf16.msra.mxu1 %v1074_v5 }
 0x10b   :  { %878 = vmatprep.subr.bf16.mxu1 %v1010_v0 }
 0x10e   :  { %879 = vmatpush3.bf16.msra.mxu1 %v1083_v6 }
 0x10f   :  { %880 = vmatprep.subr.bf16.mxu1 %v1010_v0 }
 0x112   :  { %881 = vmatpush3.bf16.msra.mxu1 %v1092_v7 }
 0x113   :  { %882 = vmatprep.subr.bf16.mxu1 %v1010_v0 }
 0x116   :  { %883 = vmatpush3.bf16.msra.mxu1 %v1101_v8 }
 0x117   :  { %908 = vmatprep.subr.bf16.mxu1 %v1010_v0 }
 0x1b9   :  { %v188_v26 = vpop.f32.mrf.mxu1 }
 0x1ba   :  { %v195_v28 = vadd.f32 %v661_v25, %v188_v26 }
 0x1bb   :  { %v846_v29 = vpop.f32.mrf.mxu1 }
 0x1bc   :  { %982 = vtanh.f32 %v195_v28 }
 0x1bd   :  { %v191_v30 = vpop.f32.mrf.mxu1 }
 0x1be   :  { %v196_v31 = vadd.f32 %v662_v27, %v191_v30 }
 0x1bf   :  { %v847_v32 = vpop.f32.mrf.mxu1 }
 0x1c0   :  { %984 = vtanh.f32 %v196_v31  ;;  %v734_v32 = vld [vmem:[%s1272_s0 + $0x38] sm:$0xff]  }
 0x1c9   :  { %v983_v33 = vpop.eup %982 }
 0x1cd   :  { %v985_v34 = vpop.eup %984 }
 0x1ce   :  { %v199_v35 = vpack.c.bf16 %v985_v34, %v983_v33  ;;  %v715_v33 = vunpack.c.l.bf16 %v734_v32 }
 0x1d0   :  { %723 = vst [vmem:[%s1273_s3 + $0x8] sm:$0xff] %v199_v35   ;;  %865 = vmatmul.mubr.bf16.vlgmr.msra.gmra.mxu0 %v199_v35  ;;  %v716_v35 = vunpack.c.h.bf16 %v734_v32 }
 0x1d1   :  { %889 = vmatpush3.bf16.msra.mxu0 %v1036_v1  ;;  %904 = vmatprep.mubr.msk.bf16.mxu0 %vm1011_vm0, %v1010_v0 }
 0x1d2   :  { %890 = vmatprep.subr.bf16.mxu0 %v1010_v0 }
 0x1d5   :  { %891 = vmatpush3.bf16.msra.mxu0 %v1047_v2 }
 0x1d6   :  { %892 = vmatprep.subr.bf16.mxu0 %v1010_v0 }
 0x1d9   :  { %893 = vmatpush3.bf16.msra.mxu0 %v1056_v3 }
 0x1da   :  { %894 = vmatprep.subr.bf16.mxu0 %v1010_v0 }
 0x1dd   :  { %895 = vmatpush3.bf16.msra.mxu0 %v1065_v4 }
 0x1de   :  { %896 = vmatprep.subr.bf16.mxu0 %v1010_v0 }
 0x1e1   :  { %897 = vmatpush3.bf16.msra.mxu0 %v1074_v5 }
 0x1e2   :  { %898 = vmatprep.subr.bf16.mxu0 %v1010_v0 }
 0x1e5   :  { %899 = vmatpush3.bf16.msra.mxu0 %v1083_v6 }
 0x1e6   :  { %900 = vmatprep.subr.bf16.mxu0 %v1010_v0 }
 0x1e9   :  { %901 = vmatpush3.bf16.msra.mxu0 %v1092_v7 }
 0x1ea   :  { %902 = vmatprep.subr.bf16.mxu0 %v1010_v0 }
 0x1ed   :  { %903 = vmatpush3.bf16.msra.mxu0 %v1101_v8 }
 0x1ee   :  { %928 = vmatprep.subr.bf16.mxu0 %v1010_v0 }
 0x290   :  { %v249_v38 = vpop.f32.mrf.mxu0 }
 0x291   :  { %v256_v40 = vadd.f32 %v670_v37, %v249_v38 }
 0x292   :  { %v866_v41 = vpop.f32.mrf.mxu0 }
 0x293   :  { %986 = vtanh.f32 %v256_v40 }
 0x294   :  { %v252_v42 = vpop.f32.mrf.mxu0 }
 0x295   :  { %v257_v43 = vadd.f32 %v671_v39, %v252_v42 }
 0x296   :  { %v867_v44 = vpop.f32.mrf.mxu0 }
 0x297   :  { %988 = vtanh.f32 %v257_v43 }
 0x2a0   :  { %v987_v45 = vpop.eup %986 }
 0x2a4   :  { %v989_v46 = vpop.eup %988 }
 0x2a5   :  { %v260_v47 = vpack.c.bf16 %v989_v46, %v987_v45 }
 0x2a7   :  { %725 = vst [vmem:[%s1273_s3 + $0x10] sm:$0xff] %v260_v47   ;;  %885 = vmatmul.mubr.bf16.vlgmr.msra.gmra.mxu1 %v260_v47 }
 0x2a8   :  { %909 = vmatpush3.bf16.msra.mxu1 %v1036_v1  ;;  %924 = vmatprep.mubr.msk.bf16.mxu1 %vm1011_vm0, %v1010_v0 }
 0x2a9   :  { %910 = vmatprep.subr.bf16.mxu1 %v1010_v0 }
 0x2ac   :  { %911 = vmatpush3.bf16.msra.mxu1 %v1047_v2 }
 0x2ad   :  { %912 = vmatprep.subr.bf16.mxu1 %v1010_v0 }
 0x2b0   :  { %913 = vmatpush3.bf16.msra.mxu1 %v1056_v3 }
 0x2b1   :  { %914 = vmatprep.subr.bf16.mxu1 %v1010_v0 }
 0x2b4   :  { %915 = vmatpush3.bf16.msra.mxu1 %v1065_v4 }
 0x2b5   :  { %916 = vmatprep.subr.bf16.mxu1 %v1010_v0 }
 0x2b8   :  { %917 = vmatpush3.bf16.msra.mxu1 %v1074_v5 }
 0x2b9   :  { %918 = vmatprep.subr.bf16.mxu1 %v1010_v0 }
 0x2bc   :  { %919 = vmatpush3.bf16.msra.mxu1 %v1083_v6 }
 0x2bd   :  { %920 = vmatprep.subr.bf16.mxu1 %v1010_v0 }
 0x2c0   :  { %921 = vmatpush3.bf16.msra.mxu1 %v1092_v7 }
 0x2c1   :  { %922 = vmatprep.subr.bf16.mxu1 %v1010_v0 }
 0x2c4   :  { %923 = vmatpush3.bf16.msra.mxu1 %v1101_v8 }
 0x2c5   :  { %948 = vmatprep.subr.bf16.mxu1 %v1010_v0 }
 0x367   :  { %v310_v50 = vpop.f32.mrf.mxu1 }
 0x368   :  { %v317_v52 = vadd.f32 %v679_v49, %v310_v50 }
 0x369   :  { %v886_v53 = vpop.f32.mrf.mxu1 }
 0x36a   :  { %990 = vtanh.f32 %v317_v52 }
 0x36b   :  { %v313_v54 = vpop.f32.mrf.mxu1 }
 0x36c   :  { %v318_v55 = vadd.f32 %v680_v51, %v313_v54 }
 0x36d   :  { %v887_v56 = vpop.f32.mrf.mxu1 }
 0x36e   :  { %992 = vtanh.f32 %v318_v55 }
 0x377   :  { %v991_v57 = vpop.eup %990 }
 0x37b   :  { %v993_v58 = vpop.eup %992 }
 0x37c   :  { %v321_v59 = vpack.c.bf16 %v993_v58, %v991_v57 }
 0x37e   :  { %727 = vst [vmem:[%s1273_s3 + $0x18] sm:$0xff] %v321_v59   ;;  %905 = vmatmul.mubr.bf16.vlgmr.msra.gmra.mxu0 %v321_v59 }
 0x37f   :  { %929 = vmatpush3.bf16.msra.mxu0 %v1036_v1  ;;  %944 = vmatprep.mubr.msk.bf16.mxu0 %vm1011_vm0, %v1010_v0 }
 0x380   :  { %930 = vmatprep.subr.bf16.mxu0 %v1010_v0 }
 0x383   :  { %931 = vmatpush3.bf16.msra.mxu0 %v1047_v2 }
 0x384   :  { %932 = vmatprep.subr.bf16.mxu0 %v1010_v0 }
 0x387   :  { %933 = vmatpush3.bf16.msra.mxu0 %v1056_v3 }
 0x388   :  { %934 = vmatprep.subr.bf16.mxu0 %v1010_v0 }
 0x38b   :  { %935 = vmatpush3.bf16.msra.mxu0 %v1065_v4 }
 0x38c   :  { %936 = vmatprep.subr.bf16.mxu0 %v1010_v0 }
 0x38f   :  { %937 = vmatpush3.bf16.msra.mxu0 %v1074_v5 }
 0x390   :  { %938 = vmatprep.subr.bf16.mxu0 %v1010_v0 }
 0x393   :  { %939 = vmatpush3.bf16.msra.mxu0 %v1083_v6 }
 0x394   :  { %940 = vmatprep.subr.bf16.mxu0 %v1010_v0 }
 0x397   :  { %941 = vmatpush3.bf16.msra.mxu0 %v1092_v7 }
 0x398   :  { %942 = vmatprep.subr.bf16.mxu0 %v1010_v0 }
 0x39b   :  { %943 = vmatpush3.bf16.msra.mxu0 %v1101_v8 }
 0x43e   :  { %v371_v62 = vpop.f32.mrf.mxu0 }
 0x43f   :  { %v378_v9 = vadd.f32 %v688_v61, %v371_v62 }
 0x440   :  { %v906_v10 = vpop.f32.mrf.mxu0 }
 0x441   :  { %994 = vtanh.f32 %v378_v9 }
 0x442   :  { %v374_v11 = vpop.f32.mrf.mxu0 }
 0x443   :  { %v379_v12 = vadd.f32 %v689_v63, %v374_v11 }
 0x444   :  { %v907_v13 = vpop.f32.mrf.mxu0 }
 0x445   :  { %996 = vtanh.f32 %v379_v12 }
 0x44e   :  { %v995_v14 = vpop.eup %994 }
 0x452   :  { %v997_v15 = vpop.eup %996 }
 0x453   :  { %v382_v16 = vpack.c.bf16 %v997_v15, %v995_v14 }
 0x455   :  { %729 = vst [vmem:[%s1273_s3 + $0x20] sm:$0xff] %v382_v16   ;;  %925 = vmatmul.mubr.bf16.vlgmr.msra.gmra.mxu1 %v382_v16 }
 0x456   :  { %949 = vmatpush3.bf16.msra.mxu1 %v1036_v1  ;;  %964 = vmatprep.mubr.msk.bf16.mxu1 %vm1011_vm0, %v1010_v0  ;;  %v730_v1 = vld [vmem:[%s1272_s0 + $0x28] sm:$0xff]  }
 0x457   :  { %950 = vmatprep.subr.bf16.mxu1 %v1010_v0 }
 0x45a   :  { %951 = vmatpush3.bf16.msra.mxu1 %v1047_v2  ;;  %v697_v2 = vunpack.c.l.bf16 %v730_v1 }
 0x45b   :  { %952 = vmatprep.subr.bf16.mxu1 %v1010_v0 }
 0x45e   :  { %953 = vmatpush3.bf16.msra.mxu1 %v1056_v3 }
 0x45f   :  { %954 = vmatprep.subr.bf16.mxu1 %v1010_v0 }
 0x462   :  { %955 = vmatpush3.bf16.msra.mxu1 %v1065_v4  ;;  %v698_v4 = vunpack.c.h.bf16 %v730_v1 }
 0x463   :  { %956 = vmatprep.subr.bf16.mxu1 %v1010_v0 }
 0x466   :  { %957 = vmatpush3.bf16.msra.mxu1 %v1074_v5 }
 0x467   :  { %958 = vmatprep.subr.bf16.mxu1 %v1010_v0 }
 0x46a   :  { %959 = vmatpush3.bf16.msra.mxu1 %v1083_v6 }
 0x46b   :  { %960 = vmatprep.subr.bf16.mxu1 %v1010_v0 }
 0x46e   :  { %961 = vmatpush3.bf16.msra.mxu1 %v1092_v7 }
 0x46f   :  { %962 = vmatprep.subr.bf16.mxu1 %v1010_v0  ;;  %v732_v0 = vld [vmem:[%s1272_s0 + $0x30] sm:$0xff]  }
 0x470   :  { %v707_v23 = vunpack.c.h.bf16 %v732_v0 }
 0x472   :  { %963 = vmatpush3.bf16.msra.mxu1 %v1101_v8  ;;  %v706_v8 = vunpack.c.l.bf16 %v732_v0 }
 0x515   :  { %v432_v3 = vpop.f32.mrf.mxu1 }
 0x516   :  { %v439_v5 = vadd.f32 %v697_v2, %v432_v3 }
 0x517   :  { %v926_v17 = vpop.f32.mrf.mxu1 }
 0x518   :  { %998 = vtanh.f32 %v439_v5 }
 0x519   :  { %v435_v18 = vpop.f32.mrf.mxu1 }
 0x51a   :  { %v440_v19 = vadd.f32 %v698_v4, %v435_v18 }
 0x51b   :  { %v927_v6 = vpop.f32.mrf.mxu1 }
 0x51c   :  { %1000 = vtanh.f32 %v440_v19 }
 0x525   :  { %v999_v20 = vpop.eup %998 }
 0x529   :  { %v1001_v7 = vpop.eup %1000 }
 0x52a   :  { %v443_v21 = vpack.c.bf16 %v1001_v7, %v999_v20 }
 0x52c   :  { %731 = vst [vmem:[%s1273_s3 + $0x28] sm:$0xff] %v443_v21   ;;  %945 = vmatmul.mubr.bf16.vlgmr.msra.gmra.mxu0 %v443_v21 }
 0x5ec   :  { %v493_v22 = vpop.f32.mrf.mxu0 }
 0x5ed   :  { %v500_v24 = vadd.f32 %v706_v8, %v493_v22 }
 0x5ee   :  { %v946_v25 = vpop.f32.mrf.mxu0 }
 0x5ef   :  { %1002 = vtanh.f32 %v500_v24 }
 0x5f0   :  { %v496_v26 = vpop.f32.mrf.mxu0 }
 0x5f1   :  { %v501_v27 = vadd.f32 %v707_v23, %v496_v26 }
 0x5f2   :  { %v947_v28 = vpop.f32.mrf.mxu0 }
 0x5f3   :  { %1004 = vtanh.f32 %v501_v27 }
 0x5fc   :  { %v1003_v29 = vpop.eup %1002 }
 0x600   :  { %v1005_v30 = vpop.eup %1004 }
 0x601   :  { %v504_v31 = vpack.c.bf16 %v1005_v30, %v1003_v29 }
 0x603   :  { %733 = vst [vmem:[%s1273_s3 + $0x30] sm:$0xff] %v504_v31   ;;  %965 = vmatmul.mubr.bf16.vlgmr.msra.gmra.mxu1 %v504_v31 }
 0x6c3   :  { %v554_v34 = vpop.f32.mrf.mxu1 }
 0x6c4   :  { %v561_v36 = vadd.f32 %v715_v33, %v554_v34 }
 0x6c5   :  { %v966_v37 = vpop.f32.mrf.mxu1 }
 0x6c6   :  { %1006 = vtanh.f32 %v561_v36 }
 0x6c7   :  { %v557_v38 = vpop.f32.mrf.mxu1 }
 0x6c8   :  { %v562_v39 = vadd.f32 %v716_v35, %v557_v38 }
 0x6c9   :  { %v967_v40 = vpop.f32.mrf.mxu1 }
 0x6ca   :  { %1008 = vtanh.f32 %v562_v39 }
 0x6d3   :  { %v1007_v41 = vpop.eup %1006 }
 0x6d7   :  { %v1009_v42 = vpop.eup %1008 }
 0x6d8   :  { %v720_v43 = vpack.c.bf16 %v1009_v42, %v1007_v41 }
 0x6da   :  { %735 = vst [vmem:[%s1273_s3 + $0x38] sm:$0xff] %v720_v43  }

// kernel: seq2seq_forward.9
= control target key start
LH: loop header
LB: loop body
LE: loop exit
PB: predicated region body
PF: predicated region fallthrough
CT: control target
= control target key end

     0   :  { %s483_s1 = inlined_call_operand.vmem [shape: bf16[128,128], index: 1, kind: input, shape index: {}]   ;;  %s484_s0 = inlined_call_operand.vmem [shape: bf16[128,128], index: 0, kind: input, shape index: {}]   ;;  %s485_s2 = inlined_call_operand.vmem [shape: f32[1,128], index: 2, kind: input, shape index: {}]   ;;  %s486_s3 = inlined_call_operand.vmem [shape: f32[128,128], index: 3, kind: output, shape index: {}]  }
   0x1   :  { %v348_v0 = vld [vmem:[%s483_s1 + $0x38] sm:$0xff]   ;;  %v349_v1 = vld [vmem:[%s483_s1 + $0x30] sm:$0xff]   ;;  %v350_v2 = vld [vmem:[%s483_s1 + $0x28] sm:$0xff]  }
   0x2   :  { %300 = vmatprep.subr.bf16.mxu0 %v348_v0  ;;  %332 = vmatprep.subr.bf16.mxu1 %v348_v0  ;;  %v351_v3 = vld [vmem:[%s483_s1 + $0x20] sm:$0xff]   ;;  %v352_v6 = vld [vmem:[%s483_s1 + $0x18] sm:$0xff]   ;;  %v353_v7 = vld [vmem:[%s483_s1 + $0x10] sm:$0xff]  }
   0x3   :  { %301 = vmatpush3.bf16.msra.mxu0 %v348_v0  ;;  %340 = vmatpush3.bf16.msra.mxu1 %v348_v0  ;;  %v356_v4 = vld [vmem:[%s484_s0] sm:$0xff]   ;;  %v354_v8 = vld [vmem:[%s483_s1 + $0x8] sm:$0xff]   ;;  %v360_v12 = vld [vmem:[%s484_s0 + $0x10] sm:$0xff]  }
   0x4   :  { %302 = vmatprep.subr.bf16.mxu0 %v349_v1  ;;  %333 = vmatprep.subr.bf16.mxu1 %v349_v1  ;;  %v357_v5 = vld [vmem:[%s484_s0 + $0x20] sm:$0xff]   ;;  %v358_v10 = vld [vmem:[%s484_s0 + $0x8] sm:$0xff]   ;;  %v361_v13 = vld [vmem:[%s484_s0 + $0x30] sm:$0xff]  }
   0x5   :  { %316 = vmatprep.mubr.bf16.mxu0 %v356_v4  ;;  %324 = vmatprep.mubr.bf16.mxu1 %v357_v5  ;;  %v355_v9 = vld [vmem:[%s483_s1] sm:$0xff]   ;;  %v359_v11 = vld [vmem:[%s484_s0 + $0x28] sm:$0xff]   ;;  %v362_v14 = vld [vmem:[%s484_s0 + $0x18] sm:$0xff]  }
   0x6   :  { %v363_v15 = vld [vmem:[%s484_s0 + $0x38] sm:$0xff]   ;;  %v267_v16 = vld [vmem:[%s485_s2] ss:$0 sm:$0xff] }
   0x7   :  { %303 = vmatpush3.bf16.msra.mxu0 %v349_v1  ;;  %341 = vmatpush3.bf16.msra.mxu1 %v349_v1 }
   0x8   :  { %304 = vmatprep.subr.bf16.mxu0 %v350_v2  ;;  %334 = vmatprep.subr.bf16.mxu1 %v350_v2 }
   0xb   :  { %305 = vmatpush3.bf16.msra.mxu0 %v350_v2  ;;  %342 = vmatpush3.bf16.msra.mxu1 %v350_v2 }
   0xc   :  { %306 = vmatprep.subr.bf16.mxu0 %v351_v3  ;;  %335 = vmatprep.subr.bf16.mxu1 %v351_v3 }
   0xf   :  { %307 = vmatpush3.bf16.msra.mxu0 %v351_v3  ;;  %343 = vmatpush3.bf16.msra.mxu1 %v351_v3 }
  0x10   :  { %308 = vmatprep.subr.bf16.mxu0 %v352_v6  ;;  %336 = vmatprep.subr.bf16.mxu1 %v352_v6 }
  0x13   :  { %309 = vmatpush3.bf16.msra.mxu0 %v352_v6  ;;  %344 = vmatpush3.bf16.msra.mxu1 %v352_v6 }
  0x14   :  { %310 = vmatprep.subr.bf16.mxu0 %v353_v7  ;;  %337 = vmatprep.subr.bf16.mxu1 %v353_v7 }
  0x17   :  { %311 = vmatpush3.bf16.msra.mxu0 %v353_v7  ;;  %345 = vmatpush3.bf16.msra.mxu1 %v353_v7 }
  0x18   :  { %312 = vmatprep.subr.bf16.mxu0 %v354_v8  ;;  %338 = vmatprep.subr.bf16.mxu1 %v354_v8 }
  0x1b   :  { %313 = vmatpush3.bf16.msra.mxu0 %v354_v8  ;;  %346 = vmatpush3.bf16.msra.mxu1 %v354_v8 }
  0x1c   :  { %314 = vmatprep.subr.bf16.mxu0 %v355_v9  ;;  %339 = vmatprep.subr.bf16.mxu1 %v355_v9 }
  0x1f   :  { %315 = vmatpush3.bf16.msra.mxu0 %v355_v9  ;;  %347 = vmatpush3.bf16.msra.mxu1 %v355_v9 }
  0x22   :  { %317 = vmatmul.mubr.bf16.vlgmr.msra.gmra.mxu0 %v358_v10  ;;  %325 = vmatmul.mubr.bf16.vlgmr.msra.gmra.mxu1 %v359_v11 }
  0x23   :  { %320 = vmatprep.mubr.bf16.mxu0 %v360_v12  ;;  %328 = vmatprep.mubr.bf16.mxu1 %v361_v13 }
  0x2a   :  { %321 = vmatmul.mubr.bf16.gmra.mxu0 %v362_v14  ;;  %329 = vmatmul.mubr.bf16.gmra.mxu1 %v363_v15 }
  0xe2   :  { %v318_v17 = vpop.f32.mrf.mxu0  ;;  %v326_v18 = vpop.f32.mrf.mxu1 }
  0xe3   :  { %v193_v19 = vadd.f32 %v318_v17, %v267_v16  ;;  %v225_v20 = vadd.f32 %v326_v18, %v267_v16 }
  0xe4   :  { %v184_v21 = vpop.f32.mrf.mxu0  ;;  %v216_v22 = vpop.f32.mrf.mxu1 }
  0xe5   :  { %249 = vst [vmem:[%s486_s3 + $0x10] sm:$0xff] %v193_v19  ;;  %257 = vst [vmem:[%s486_s3 + $0x50] sm:$0xff] %v225_v20  ;;  %v185_v23 = vadd.f32 %v267_v16, %v184_v21  ;;  %v217_v24 = vadd.f32 %v267_v16, %v216_v22 }
  0xe6   :  { %v319_v25 = vpop.f32.mrf.mxu0  ;;  %v327_v26 = vpop.f32.mrf.mxu1 }
  0xe7   :  { %247 = vst [vmem:[%s486_s3] sm:$0xff] %v185_v23  ;;  %255 = vst [vmem:[%s486_s3 + $0x40] sm:$0xff] %v217_v24  ;;  %v196_v27 = vadd.f32 %v319_v25, %v267_v16  ;;  %v228_v28 = vadd.f32 %v327_v26, %v267_v16 }
  0xe8   :  { %v187_v29 = vpop.f32.mrf.mxu0  ;;  %v219_v30 = vpop.f32.mrf.mxu1 }
  0xe9   :  { %250 = vst [vmem:[%s486_s3 + $0x18] sm:$0xff] %v196_v27  ;;  %258 = vst [vmem:[%s486_s3 + $0x58] sm:$0xff] %v228_v28  ;;  %v188_v31 = vadd.f32 %v267_v16, %v187_v29  ;;  %v220_v32 = vadd.f32 %v267_v16, %v219_v30 }
  0xea   :  { %v322_v33 = vpop.f32.mrf.mxu0  ;;  %v330_v34 = vpop.f32.mrf.mxu1 }
  0xeb   :  { %248 = vst [vmem:[%s486_s3 + $0x8] sm:$0xff] %v188_v31  ;;  %256 = vst [vmem:[%s486_s3 + $0x48] sm:$0xff] %v220_v32  ;;  %v209_v35 = vadd.f32 %v322_v33, %v267_v16  ;;  %v241_v36 = vadd.f32 %v330_v34, %v267_v16 }
  0xec   :  { %v200_v37 = vpop.f32.mrf.mxu0  ;;  %v232_v38 = vpop.f32.mrf.mxu1 }
  0xed   :  { %253 = vst [vmem:[%s486_s3 + $0x30] sm:$0xff] %v209_v35  ;;  %261 = vst [vmem:[%s486_s3 + $0x70] sm:$0xff] %v241_v36  ;;  %v201_v39 = vadd.f32 %v267_v16, %v200_v37  ;;  %v233_v40 = vadd.f32 %v267_v16, %v232_v38 }
  0xee   :  { %v323_v41 = vpop.f32.mrf.mxu0  ;;  %v331_v42 = vpop.f32.mrf.mxu1 }
  0xef   :  { %251 = vst [vmem:[%s486_s3 + $0x20] sm:$0xff] %v201_v39  ;;  %259 = vst [vmem:[%s486_s3 + $0x60] sm:$0xff] %v233_v40  ;;  %v212_v43 = vadd.f32 %v323_v41, %v267_v16  ;;  %v244_v44 = vadd.f32 %v331_v42, %v267_v16 }
  0xf0   :  { %v203_v45 = vpop.f32.mrf.mxu0  ;;  %v235_v46 = vpop.f32.mrf.mxu1 }
  0xf1   :  { %254 = vst [vmem:[%s486_s3 + $0x38] sm:$0xff] %v212_v43  ;;  %262 = vst [vmem:[%s486_s3 + $0x78] sm:$0xff] %v244_v44  ;;  %v204_v47 = vadd.f32 %v267_v16, %v203_v45  ;;  %v236_v48 = vadd.f32 %v267_v16, %v235_v46 }
  0xf3   :  { %252 = vst [vmem:[%s486_s3 + $0x28] sm:$0xff] %v204_v47  ;;  %260 = vst [vmem:[%s486_s3 + $0x68] sm:$0xff] %v236_v48 }

</bundles_post_ra>
